<compile_context>
chip_gen: v5e
topology: v5e:2x2
jax: 0.10.0
libtpu: 0.0.40
codegen_flags: <defaults>
</compile_context>

<pallas_src>
import jax
import jax.numpy as jnp
from jax import lax
from jax.experimental import pallas as pl
from jax.experimental.pallas import tpu as pltpu


# ----------------------------------------------------------------------------
# Pallas kernel: one (batch, gen-column-tile) grid step of the ID-MRF loss
# ----------------------------------------------------------------------------
def _mrf_loss_kernel(tar_ref, gen_ref, out_ref, tn_sc, kmax_sc):
    """Accumulates -log(mean_p max_q cs[p, q]) for one batch element.

    tar_ref : (1, S, C)  full target feature block (resident across tiles).
    gen_ref : (1, T, C)  one column tile of gen spatial positions.
    out_ref : (1, 1, 1)  per-batch loss scalar (written on the last tile).
    tn_sc   : (S, C) bf16 normalized target features (filled at tile 0).
    kmax_sc : (S, 1) f32  running max over gen positions of cs.
    """
    j = pl.program_id(1)
    nj = pl.num_programs(1)
    tile = gen_ref.shape[1]

    @pl.when(j == 0)
    def _():
        t = tar_ref[0]                                      # (S, C)
        mt = jnp.mean(t, axis=-1, keepdims=True)            # tar channel mean
        tf = t - mt
        # NOTE: no epsilon, faithful to the PyTorch reference normalization.
        tn = tf * lax.rsqrt(jnp.sum(tf * tf, axis=-1, keepdims=True))
        tn_sc[...] = tn.astype(jnp.bfloat16)
        kmax_sc[...] = jnp.full_like(kmax_sc, -jnp.inf)

    # Center this gen tile by tar's channel mean at the SAME spatial positions
    # (the tar block stays resident in VMEM across the tile axis).
    start = pl.multiple_of(j * tile, tile)
    t_tile = tar_ref[0, pl.ds(start, tile), :]              # (T, C)
    mt_tile = jnp.mean(t_tile, axis=-1, keepdims=True)      # (T, 1)
    g = gen_ref[0]                                          # (T, C)
    gf = g - mt_tile
    gn = (gf * lax.rsqrt(jnp.sum(gf * gf, axis=-1, keepdims=True))
          ).astype(jnp.bfloat16)

    # 1x1-patch conv2d == cosine-similarity tile on the MXU (bf16 in, f32 acc):
    #   cos[p, q] = sum_c tar_norm[p, c] * gen_norm[q, c]
    cos = lax.dot_general(
        tn_sc[...], gn, (((1,), (1,)), ((), ())),
        preferred_element_type=jnp.float32,
    )                                                       # (S_tar, T)

    # cosine_dist_zero_2_one = -(cos - 1) / 2
    d = (1.0 - cos) * 0.5
    # relative distances: divide by min over the target-patch axis (column-local)
    dmin = jnp.min(d, axis=0, keepdims=True)                # (1, T)
    rel = d * pl.reciprocal(dmin + 1e-5, approx=True)
    # exp-norm relative distance: bias = 1.0, nn_stretch_sigma = 0.5
    e = jnp.exp((1.0 - rel) * 2.0)
    cs = e * pl.reciprocal(jnp.sum(e, axis=0, keepdims=True), approx=True)

    # running k_max over gen spatial positions
    kmax_sc[...] = jnp.maximum(kmax_sc[...],
                               jnp.max(cs, axis=1, keepdims=True))

    @pl.when(j == nj - 1)
    def _():
        k = kmax_sc[...]                                    # (S_tar, 1)
        div_mrf = jnp.sum(k, axis=0, keepdims=True) * (1.0 / k.shape[0])
        out_ref[0] = -jnp.log(div_mrf)                      # (1, 1) store


def _pick_gen_tile(s):
    """Largest gen-column tile <= 512 that divides S (S is full-block otherwise)."""
    if s <= 512:
        return s
    for t in (512, 256, 128, 64, 32, 16, 8):
        if s % t == 0:
            return t
    return s


def mrf_loss(gen_nhwc, tar_nhwc):
    """ID-MRF loss for one feature layer. Inputs are NHWC feature maps."""
    n, h, w, c = gen_nhwc.shape
    s = h * w
    gen = gen_nhwc.reshape(n, s, c).astype(jnp.float32)   # lane-dense, no transpose
    tar = tar_nhwc.reshape(n, s, c).astype(jnp.float32)
    tile = _pick_gen_tile(s)
    nj = s // tile
    out = pl.pallas_call(
        _mrf_loss_kernel,
        out_shape=jax.ShapeDtypeStruct((n, 1, 1), jnp.float32),
        grid=(n, nj),
        in_specs=[
            pl.BlockSpec((1, s, c), lambda i, j: (i, 0, 0)),     # tar: resident
            pl.BlockSpec((1, tile, c), lambda i, j: (i, j, 0)),  # gen: column tile
        ],
        out_specs=pl.BlockSpec((1, 1, 1), lambda i, j: (i, 0, 0)),
        scratch_shapes=[
            pltpu.VMEM((s, c), jnp.bfloat16),   # normalized tar (cached per batch)
            pltpu.VMEM((s, 1), jnp.float32),    # running k_max
        ],
        compiler_params=pltpu.CompilerParams(
            dimension_semantics=("parallel", "arbitrary"),
            vmem_limit_bytes=64 * 1024 * 1024),
    )(tar, gen)
    return jnp.sum(out[:, 0, 0])


# ----------------------------------------------------------------------------
# VGG19-style feature backbone in NHWC (deterministic random init; JAX glue)
# ----------------------------------------------------------------------------
# Layers up to relu4_2 in this module's naming (ri counts conv AND relu layers,
# so relu4_2 is the ReLU after the first conv of block 4).
# TODO(synk): pretrained VGG19 weights (torchvision, network download) cannot be
# loaded in-script; the backbone uses deterministic He-normal random weights.
VGG_CFG = [
    ("conv", 3, 64), ("conv", 64, 64), ("pool",),
    ("conv", 64, 128), ("conv", 128, 128), ("pool",),
    ("conv", 128, 256), ("conv", 256, 256), ("conv", 256, 256),
    ("conv", 256, 256), ("pool",),
    ("conv", 256, 512),
]

IMAGENET_MEAN = jnp.array([0.485, 0.456, 0.406], jnp.float32).reshape(1, 1, 1, 3)
IMAGENET_STD = jnp.array([0.229, 0.224, 0.225], jnp.float32).reshape(1, 1, 1, 3)


def init_vgg_params(key):
    params = []
    for entry in VGG_CFG:
        if entry[0] == "conv":
            _, cin, cout = entry
            key, k = jax.random.split(key)
            w = jax.random.normal(k, (3, 3, cin, cout), jnp.float32)  # HWIO
            w = w * jnp.sqrt(2.0 / (cin * 9))
            b = jnp.zeros((cout,), jnp.float32)
            params.append((w, b))
        else:
            params.append(None)
    return params


def vgg_features(params, x_nchw):
    """Mimics VGG19FeatLayer.forward naming; runs in NHWC so feature maps feed
    the Pallas kernel with zero layout churn (channels already on lanes)."""
    x = jnp.transpose(x_nchw, (0, 2, 3, 1))    # single cheap 3-channel transpose
    x = (x - IMAGENET_MEAN) / IMAGENET_STD
    feats = {}
    ci, ri = 1, 0
    for entry, p in zip(VGG_CFG, params):
        if entry[0] == "conv":
            w, b = p
            x = lax.conv_general_dilated(
                x, w, window_strides=(1, 1), padding="SAME",
                dimension_numbers=("NHWC", "HWIO", "NHWC"),
            ) + b[None, None, None, :]
            ri += 1
            feats[f"conv{ci}_{ri}"] = x
            x = jnp.maximum(x, 0.0)
            ri += 1
            feats[f"relu{ci}_{ri}"] = x
        else:  # 2x2 max-pool, stride 2
            x = lax.reduce_window(
                x, -jnp.inf, lax.max, (1, 2, 2, 1), (1, 2, 2, 1), "VALID")
            ri = 0
            feats[f"pool_{ci}"] = x
            ci += 1
    return feats


# ----------------------------------------------------------------------------
# IDMRFLoss forward
# ----------------------------------------------------------------------------
FEAT_STYLE_LAYERS = {"relu3_2": 1.0, "relu4_2": 1.0}
FEAT_CONTENT_LAYERS = {"relu4_2": 1.0}
LAMBDA_STYLE = 1.0
LAMBDA_CONTENT = 1.0


def idmrf_loss(params, gen, tar):
    gen_feats = vgg_features(params, gen)
    tar_feats = vgg_features(params, tar)
    # Dedupe layers shared between style and content (relu4_2): each layer's
    # Pallas kernel runs exactly once, weighted by the combined coefficient.
    layer_weights = {}
    for layer, w in FEAT_STYLE_LAYERS.items():
        layer_weights[layer] = layer_weights.get(layer, 0.0) + w * LAMBDA_STYLE
    for layer, w in FEAT_CONTENT_LAYERS.items():
        layer_weights[layer] = layer_weights.get(layer, 0.0) + w * LAMBDA_CONTENT
    total = 0.0
    for layer, w in layer_weights.items():
        total = total + w * mrf_loss(gen_feats[layer], tar_feats[layer])
    return total


if __name__ == "__main__":
    key = jax.random.PRNGKey(0)
    kp, kg, kt = jax.random.split(key, 3)
    params = init_vgg_params(kp)
    # NCHW inputs (images in [0,1]); relu3_2 -> (2,8,8,256) S=64, relu4_2 -> (2,4,4,512) S=16
    gen = jax.random.uniform(kg, (2, 3, 32, 32), jnp.float32)
    tar = jax.random.uniform(kt, (2, 3, 32, 32), jnp.float32)

    loss = jax.jit(idmrf_loss)(params, gen, tar)
    jax.block_until_ready(loss)
    assert loss.shape == () and jnp.isfinite(loss)
    print("KERNEL_OK")
</pallas_src>

<mosaic_0001>
module attributes {stable_mosaic.version = 11 : i64} {
  func.func @_mrf_loss_kernel(%arg0: i32, %arg1: i32, %arg2: memref<1x16x512xf32, #tpu.memory_space<vmem>>, %arg3: memref<1x16x512xf32, #tpu.memory_space<vmem>>, %arg4: memref<1x1x1xf32, #tpu.memory_space<vmem>>, %arg5: memref<16x512xbf16, #tpu.memory_space<vmem>>, %arg6: memref<16x1xf32, #tpu.memory_space<vmem>>) attributes {dimension_semantics = [#tpu.dimension_semantics<parallel>, #tpu.dimension_semantics<arbitrary>], iteration_bounds = array<i64: 2, 1>, scalar_prefetch = 0 : i64, scratch_operands = 2 : i64, tpu.core_type = #tpu.core_type<tc>, window_params = [{transform_indices = @transform_0, window_bounds = array<i64: 1, 16, 512>}, {transform_indices = @transform_1, window_bounds = array<i64: 1, 16, 512>}, {transform_indices = @transform_2, window_bounds = array<i64: 1, 1, 1>}]} {
    %c0_i32 = arith.constant 0 : i32
    %0 = arith.cmpi eq, %arg1, %c0_i32 : i32
    %1 = arith.extui %0 : i1 to i32
    %c0_i32_0 = arith.constant 0 : i32
    %2 = arith.cmpi ne, %1, %c0_i32_0 : i32
    scf.if %2 {
      %c0_24 = arith.constant 0 : index
      %c0_25 = arith.constant 0 : index
      %c0_26 = arith.constant 0 : index
      %54 = vector.load %arg2[%c0_24, %c0_25, %c0_26] : memref<1x16x512xf32, #tpu.memory_space<vmem>>, vector<1x16x512xf32>
      %55 = vector.shape_cast %54 : vector<1x16x512xf32> to vector<16x512xf32>
      %cst_27 = arith.constant dense<0.000000e+00> : vector<16xf32>
      %56 = vector.multi_reduction <add>, %55, %cst_27 [1] : vector<16x512xf32> to vector<16xf32>
      %57 = vector.shape_cast %56 : vector<16xf32> to vector<16x1xf32>
      %cst_28 = arith.constant 5.120000e+02 : f32
      %58 = vector.broadcast %cst_28 : f32 to vector<16x1xf32>
      %59 = arith.divf %57, %58 : vector<16x1xf32>
      %60 = vector.broadcast %59 : vector<16x1xf32> to vector<16x512xf32>
      %61 = arith.subf %55, %60 : vector<16x512xf32>
      %62 = arith.mulf %61, %61 : vector<16x512xf32>
      %cst_29 = arith.constant dense<0.000000e+00> : vector<16xf32>
      %63 = vector.multi_reduction <add>, %62, %cst_29 [1] : vector<16x512xf32> to vector<16xf32>
      %64 = vector.shape_cast %63 : vector<16xf32> to vector<16x1xf32>
      %65 = math.rsqrt %64 : vector<16x1xf32>
      %66 = vector.broadcast %65 : vector<16x1xf32> to vector<16x512xf32>
      %67 = arith.mulf %61, %66 : vector<16x512xf32>
      %68 = arith.truncf %67 : vector<16x512xf32> to vector<16x512xbf16>
      %c0_30 = arith.constant 0 : index
      %c0_31 = arith.constant 0 : index
      %69 = vector.load %arg5[%c0_30, %c0_31] : memref<16x512xbf16, #tpu.memory_space<vmem>>, vector<16x512xbf16>
      tpu.vector_store %arg5[%c0_30, %c0_31], %68 {strides = array<i32>} : memref<16x512xbf16, #tpu.memory_space<vmem>>, vector<16x512xbf16>,
      %cst_32 = arith.constant 0xFF800000 : f32
      %70 = vector.broadcast %cst_32 : f32 to vector<16x1xf32>
      %c0_33 = arith.constant 0 : index
      %c0_34 = arith.constant 0 : index
      %71 = vector.load %arg6[%c0_33, %c0_34] : memref<16x1xf32, #tpu.memory_space<vmem>>, vector<16x1xf32>
      tpu.vector_store %arg6[%c0_33, %c0_34], %70 {strides = array<i32>} : memref<16x1xf32, #tpu.memory_space<vmem>>, vector<16x1xf32>,
    } else {
    }
    %c16_i32 = arith.constant 16 : i32
    %3 = arith.muli %arg1, %c16_i32 : i32
    %4 = tpu.assume_multiple %3, 16 : i32
    %c0 = arith.constant 0 : index
    %5 = arith.index_cast %4 : i32 to index
    %c0_1 = arith.constant 0 : index
    %6 = vector.load %arg2[%c0, %5, %c0_1] : memref<1x16x512xf32, #tpu.memory_space<vmem>>, vector<1x16x512xf32>
    %7 = vector.shape_cast %6 : vector<1x16x512xf32> to vector<16x512xf32>
    %cst = arith.constant dense<0.000000e+00> : vector<16xf32>
    %8 = vector.multi_reduction <add>, %7, %cst [1] : vector<16x512xf32> to vector<16xf32>
    %9 = vector.shape_cast %8 : vector<16xf32> to vector<16x1xf32>
    %cst_2 = arith.constant 5.120000e+02 : f32
    %10 = vector.broadcast %cst_2 : f32 to vector<16x1xf32>
    %11 = arith.divf %9, %10 : vector<16x1xf32>
    %c0_3 = arith.constant 0 : index
    %c0_4 = arith.constant 0 : index
    %c0_5 = arith.constant 0 : index
    %12 = vector.load %arg3[%c0_3, %c0_4, %c0_5] : memref<1x16x512xf32, #tpu.memory_space<vmem>>, vector<1x16x512xf32>
    %13 = vector.shape_cast %12 : vector<1x16x512xf32> to vector<16x512xf32>
    %14 = vector.broadcast %11 : vector<16x1xf32> to vector<16x512xf32>
    %15 = arith.subf %13, %14 : vector<16x512xf32>
    %16 = arith.mulf %15, %15 : vector<16x512xf32>
    %cst_6 = arith.constant dense<0.000000e+00> : vector<16xf32>
    %17 = vector.multi_reduction <add>, %16, %cst_6 [1] : vector<16x512xf32> to vector<16xf32>
    %18 = vector.shape_cast %17 : vector<16xf32> to vector<16x1xf32>
    %19 = math.rsqrt %18 : vector<16x1xf32>
    %20 = vector.broadcast %19 : vector<16x1xf32> to vector<16x512xf32>
    %21 = arith.mulf %15, %20 : vector<16x512xf32>
    %22 = arith.truncf %21 : vector<16x512xf32> to vector<16x512xbf16>
    %c0_7 = arith.constant 0 : index
    %c0_8 = arith.constant 0 : index
    %23 = vector.load %arg5[%c0_7, %c0_8] : memref<16x512xbf16, #tpu.memory_space<vmem>>, vector<16x512xbf16>
    %cst_9 = arith.constant dense<0.000000e+00> : vector<16x16xf32>
    %24 = tpu.matmul %23, %22, %cst_9 {dimension_numbers = #tpu.dot_dimension_numbers<[1], [1], [0], [0], [0, 0, 1, 0], [], []>} : vector<16x512xbf16>, vector<16x512xbf16>, vector<16x16xf32> -> vector<16x16xf32>
    %cst_10 = arith.constant 1.000000e+00 : f32
    %25 = vector.broadcast %cst_10 : f32 to vector<16x16xf32>
    %26 = arith.subf %25, %24 : vector<16x16xf32>
    %cst_11 = arith.constant 5.000000e-01 : f32
    %27 = vector.broadcast %cst_11 : f32 to vector<16x16xf32>
    %28 = arith.mulf %26, %27 : vector<16x16xf32>
    %cst_12 = arith.constant dense<0x7F800000> : vector<16xf32>
    %29 = vector.multi_reduction <minimumf>, %28, %cst_12 [0] : vector<16x16xf32> to vector<16xf32>
    %30 = vector.shape_cast %29 : vector<16xf32> to vector<1x16xf32>
    %cst_13 = arith.constant 9.99999974E-6 : f32
    %31 = vector.broadcast %cst_13 : f32 to vector<1x16xf32>
    %32 = arith.addf %30, %31 : vector<1x16xf32>
    %33 = tpu.reciprocal %32 {approx = true} : vector<1x16xf32> -> vector<1x16xf32>
    %34 = vector.broadcast %33 : vector<1x16xf32> to vector<16x16xf32>
    %35 = arith.mulf %28, %34 : vector<16x16xf32>
    %cst_14 = arith.constant 1.000000e+00 : f32
    %36 = vector.broadcast %cst_14 : f32 to vector<16x16xf32>
    %37 = arith.subf %36, %35 : vector<16x16xf32>
    %cst_15 = arith.constant 2.000000e+00 : f32
    %38 = vector.broadcast %cst_15 : f32 to vector<16x16xf32>
    %39 = arith.mulf %37, %38 : vector<16x16xf32>
    %40 = math.exp %39 : vector<16x16xf32>
    %cst_16 = arith.constant dense<0.000000e+00> : vector<16xf32>
    %41 = vector.multi_reduction <add>, %40, %cst_16 [0] : vector<16x16xf32> to vector<16xf32>
    %42 = vector.shape_cast %41 : vector<16xf32> to vector<1x16xf32>
    %43 = tpu.reciprocal %42 {approx = true} : vector<1x16xf32> -> vector<1x16xf32>
    %44 = vector.broadcast %43 : vector<1x16xf32> to vector<16x16xf32>
    %45 = arith.mulf %40, %44 : vector<16x16xf32>
    %c0_17 = arith.constant 0 : index
    %c0_18 = arith.constant 0 : index
    %46 = vector.load %arg6[%c0_17, %c0_18] : memref<16x1xf32, #tpu.memory_space<vmem>>, vector<16x1xf32>
    %cst_19 = arith.constant dense<0xFF800000> : vector<16xf32>
    %47 = vector.multi_reduction <maximumf>, %45, %cst_19 [1] : vector<16x16xf32> to vector<16xf32>
    %48 = vector.shape_cast %47 : vector<16xf32> to vector<16x1xf32>
    %49 = arith.maximumf %46, %48 : vector<16x1xf32>
    %c0_20 = arith.constant 0 : index
    %c0_21 = arith.constant 0 : index
    %50 = vector.load %arg6[%c0_20, %c0_21] : memref<16x1xf32, #tpu.memory_space<vmem>>, vector<16x1xf32>
    tpu.vector_store %arg6[%c0_20, %c0_21], %49 {strides = array<i32>} : memref<16x1xf32, #tpu.memory_space<vmem>>, vector<16x1xf32>,
    %c0_i32_22 = arith.constant 0 : i32
    %51 = arith.cmpi eq, %arg1, %c0_i32_22 : i32
    %52 = arith.extui %51 : i1 to i32
    %c0_i32_23 = arith.constant 0 : i32
    %53 = arith.cmpi ne, %52, %c0_i32_23 : i32
    scf.if %53 {
      %c0_24 = arith.constant 0 : index
      %c0_25 = arith.constant 0 : index
      %54 = vector.load %arg6[%c0_24, %c0_25] : memref<16x1xf32, #tpu.memory_space<vmem>>, vector<16x1xf32>
      %cst_26 = arith.constant dense<0.000000e+00> : vector<1xf32>
      %55 = vector.multi_reduction <add>, %54, %cst_26 [0] : vector<16x1xf32> to vector<1xf32>
      %56 = vector.shape_cast %55 : vector<1xf32> to vector<1x1xf32>
      %cst_27 = arith.constant 6.250000e-02 : f32
      %57 = vector.broadcast %cst_27 : f32 to vector<1x1xf32>
      %58 = arith.mulf %56, %57 : vector<1x1xf32>
      %59 = math.log %58 : vector<1x1xf32>
      %cst_28 = arith.constant 0.000000e+00 : f32
      %60 = vector.broadcast %cst_28 : f32 to vector<1x1xf32>
      %61 = arith.subf %60, %59 : vector<1x1xf32>
      %c0_29 = arith.constant 0 : index
      %c0_30 = arith.constant 0 : index
      %c0_31 = arith.constant 0 : index
      %62 = vector.load %arg4[%c0_29, %c0_30, %c0_31] : memref<1x1x1xf32, #tpu.memory_space<vmem>>, vector<1x1x1xf32>
      %63 = vector.shape_cast %62 : vector<1x1x1xf32> to vector<1x1xf32>
      %64 = vector.shape_cast %61 : vector<1x1xf32> to vector<1x1x1xf32>
      tpu.vector_store %arg4[%c0_29, %c0_30, %c0_31], %64 {strides = array<i32>} : memref<1x1x1xf32, #tpu.memory_space<vmem>>, vector<1x1x1xf32>,
    } else {
    }
    return
  }
  func.func @transform_0(%arg0: i32, %arg1: i32) -> (i32, i32, i32) {
    %c0_i32 = arith.constant 0 : i32
    %c0_i32_0 = arith.constant 0 : i32
    %c0_i32_1 = arith.constant 0 : i32
    return %arg0, %c0_i32, %c0_i32_0 : i32, i32, i32
  }
  func.func @transform_1(%arg0: i32, %arg1: i32) -> (i32, i32, i32) {
    %c0_i32 = arith.constant 0 : i32
    %c0_i32_0 = arith.constant 0 : i32
    return %arg0, %arg1, %c0_i32 : i32, i32, i32
  }
  func.func @transform_2(%arg0: i32, %arg1: i32) -> (i32, i32, i32) {
    %c0_i32 = arith.constant 0 : i32
    %c0_i32_0 = arith.constant 0 : i32
    %c0_i32_1 = arith.constant 0 : i32
    return %arg0, %c0_i32, %c0_i32_0 : i32, i32, i32
  }
}

module attributes {stable_mosaic.version = 11 : i64} {
  func.func @_mrf_loss_kernel(%arg0: i32, %arg1: i32, %arg2: memref<1x64x256xf32, #tpu.memory_space<vmem>>, %arg3: memref<1x64x256xf32, #tpu.memory_space<vmem>>, %arg4: memref<1x1x1xf32, #tpu.memory_space<vmem>>, %arg5: memref<64x256xbf16, #tpu.memory_space<vmem>>, %arg6: memref<64x1xf32, #tpu.memory_space<vmem>>) attributes {dimension_semantics = [#tpu.dimension_semantics<parallel>, #tpu.dimension_semantics<arbitrary>], iteration_bounds = array<i64: 2, 1>, scalar_prefetch = 0 : i64, scratch_operands = 2 : i64, tpu.core_type = #tpu.core_type<tc>, window_params = [{transform_indices = @transform_0, window_bounds = array<i64: 1, 64, 256>}, {transform_indices = @transform_1, window_bounds = array<i64: 1, 64, 256>}, {transform_indices = @transform_2, window_bounds = array<i64: 1, 1, 1>}]} {
    %c0_i32 = arith.constant 0 : i32
    %0 = arith.cmpi eq, %arg1, %c0_i32 : i32
    %1 = arith.extui %0 : i1 to i32
    %c0_i32_0 = arith.constant 0 : i32
    %2 = arith.cmpi ne, %1, %c0_i32_0 : i32
    scf.if %2 {
      %c0_24 = arith.constant 0 : index
      %c0_25 = arith.constant 0 : index
      %c0_26 = arith.constant 0 : index
      %54 = vector.load %arg2[%c0_24, %c0_25, %c0_26] : memref<1x64x256xf32, #tpu.memory_space<vmem>>, vector<1x64x256xf32>
      %55 = vector.shape_cast %54 : vector<1x64x256xf32> to vector<64x256xf32>
      %cst_27 = arith.constant dense<0.000000e+00> : vector<64xf32>
      %56 = vector.multi_reduction <add>, %55, %cst_27 [1] : vector<64x256xf32> to vector<64xf32>
      %57 = vector.shape_cast %56 : vector<64xf32> to vector<64x1xf32>
      %cst_28 = arith.constant 2.560000e+02 : f32
      %58 = vector.broadcast %cst_28 : f32 to vector<64x1xf32>
      %59 = arith.divf %57, %58 : vector<64x1xf32>
      %60 = vector.broadcast %59 : vector<64x1xf32> to vector<64x256xf32>
      %61 = arith.subf %55, %60 : vector<64x256xf32>
      %62 = arith.mulf %61, %61 : vector<64x256xf32>
      %cst_29 = arith.constant dense<0.000000e+00> : vector<64xf32>
      %63 = vector.multi_reduction <add>, %62, %cst_29 [1] : vector<64x256xf32> to vector<64xf32>
      %64 = vector.shape_cast %63 : vector<64xf32> to vector<64x1xf32>
      %65 = math.rsqrt %64 : vector<64x1xf32>
      %66 = vector.broadcast %65 : vector<64x1xf32> to vector<64x256xf32>
      %67 = arith.mulf %61, %66 : vector<64x256xf32>
      %68 = arith.truncf %67 : vector<64x256xf32> to vector<64x256xbf16>
      %c0_30 = arith.constant 0 : index
      %c0_31 = arith.constant 0 : index
      %69 = vector.load %arg5[%c0_30, %c0_31] : memref<64x256xbf16, #tpu.memory_space<vmem>>, vector<64x256xbf16>
      tpu.vector_store %arg5[%c0_30, %c0_31], %68 {strides = array<i32>} : memref<64x256xbf16, #tpu.memory_space<vmem>>, vector<64x256xbf16>,
      %cst_32 = arith.constant 0xFF800000 : f32
      %70 = vector.broadcast %cst_32 : f32 to vector<64x1xf32>
      %c0_33 = arith.constant 0 : index
      %c0_34 = arith.constant 0 : index
      %71 = vector.load %arg6[%c0_33, %c0_34] : memref<64x1xf32, #tpu.memory_space<vmem>>, vector<64x1xf32>
      tpu.vector_store %arg6[%c0_33, %c0_34], %70 {strides = array<i32>} : memref<64x1xf32, #tpu.memory_space<vmem>>, vector<64x1xf32>,
    } else {
    }
    %c64_i32 = arith.constant 64 : i32
    %3 = arith.muli %arg1, %c64_i32 : i32
    %4 = tpu.assume_multiple %3, 64 : i32
    %c0 = arith.constant 0 : index
    %5 = arith.index_cast %4 : i32 to index
    %c0_1 = arith.constant 0 : index
    %6 = vector.load %arg2[%c0, %5, %c0_1] : memref<1x64x256xf32, #tpu.memory_space<vmem>>, vector<1x64x256xf32>
    %7 = vector.shape_cast %6 : vector<1x64x256xf32> to vector<64x256xf32>
    %cst = arith.constant dense<0.000000e+00> : vector<64xf32>
    %8 = vector.multi_reduction <add>, %7, %cst [1] : vector<64x256xf32> to vector<64xf32>
    %9 = vector.shape_cast %8 : vector<64xf32> to vector<64x1xf32>
    %cst_2 = arith.constant 2.560000e+02 : f32
    %10 = vector.broadcast %cst_2 : f32 to vector<64x1xf32>
    %11 = arith.divf %9, %10 : vector<64x1xf32>
    %c0_3 = arith.constant 0 : index
    %c0_4 = arith.constant 0 : index
    %c0_5 = arith.constant 0 : index
    %12 = vector.load %arg3[%c0_3, %c0_4, %c0_5] : memref<1x64x256xf32, #tpu.memory_space<vmem>>, vector<1x64x256xf32>
    %13 = vector.shape_cast %12 : vector<1x64x256xf32> to vector<64x256xf32>
    %14 = vector.broadcast %11 : vector<64x1xf32> to vector<64x256xf32>
    %15 = arith.subf %13, %14 : vector<64x256xf32>
    %16 = arith.mulf %15, %15 : vector<64x256xf32>
    %cst_6 = arith.constant dense<0.000000e+00> : vector<64xf32>
    %17 = vector.multi_reduction <add>, %16, %cst_6 [1] : vector<64x256xf32> to vector<64xf32>
    %18 = vector.shape_cast %17 : vector<64xf32> to vector<64x1xf32>
    %19 = math.rsqrt %18 : vector<64x1xf32>
    %20 = vector.broadcast %19 : vector<64x1xf32> to vector<64x256xf32>
    %21 = arith.mulf %15, %20 : vector<64x256xf32>
    %22 = arith.truncf %21 : vector<64x256xf32> to vector<64x256xbf16>
    %c0_7 = arith.constant 0 : index
    %c0_8 = arith.constant 0 : index
    %23 = vector.load %arg5[%c0_7, %c0_8] : memref<64x256xbf16, #tpu.memory_space<vmem>>, vector<64x256xbf16>
    %cst_9 = arith.constant dense<0.000000e+00> : vector<64x64xf32>
    %24 = tpu.matmul %23, %22, %cst_9 {dimension_numbers = #tpu.dot_dimension_numbers<[1], [1], [0], [0], [0, 0, 1, 0], [], []>} : vector<64x256xbf16>, vector<64x256xbf16>, vector<64x64xf32> -> vector<64x64xf32>
    %cst_10 = arith.constant 1.000000e+00 : f32
    %25 = vector.broadcast %cst_10 : f32 to vector<64x64xf32>
    %26 = arith.subf %25, %24 : vector<64x64xf32>
    %cst_11 = arith.constant 5.000000e-01 : f32
    %27 = vector.broadcast %cst_11 : f32 to vector<64x64xf32>
    %28 = arith.mulf %26, %27 : vector<64x64xf32>
    %cst_12 = arith.constant dense<0x7F800000> : vector<64xf32>
    %29 = vector.multi_reduction <minimumf>, %28, %cst_12 [0] : vector<64x64xf32> to vector<64xf32>
    %30 = vector.shape_cast %29 : vector<64xf32> to vector<1x64xf32>
    %cst_13 = arith.constant 9.99999974E-6 : f32
    %31 = vector.broadcast %cst_13 : f32 to vector<1x64xf32>
    %32 = arith.addf %30, %31 : vector<1x64xf32>
    %33 = tpu.reciprocal %32 {approx = true} : vector<1x64xf32> -> vector<1x64xf32>
    %34 = vector.broadcast %33 : vector<1x64xf32> to vector<64x64xf32>
    %35 = arith.mulf %28, %34 : vector<64x64xf32>
    %cst_14 = arith.constant 1.000000e+00 : f32
    %36 = vector.broadcast %cst_14 : f32 to vector<64x64xf32>
    %37 = arith.subf %36, %35 : vector<64x64xf32>
    %cst_15 = arith.constant 2.000000e+00 : f32
    %38 = vector.broadcast %cst_15 : f32 to vector<64x64xf32>
    %39 = arith.mulf %37, %38 : vector<64x64xf32>
    %40 = math.exp %39 : vector<64x64xf32>
    %cst_16 = arith.constant dense<0.000000e+00> : vector<64xf32>
    %41 = vector.multi_reduction <add>, %40, %cst_16 [0] : vector<64x64xf32> to vector<64xf32>
    %42 = vector.shape_cast %41 : vector<64xf32> to vector<1x64xf32>
    %43 = tpu.reciprocal %42 {approx = true} : vector<1x64xf32> -> vector<1x64xf32>
    %44 = vector.broadcast %43 : vector<1x64xf32> to vector<64x64xf32>
    %45 = arith.mulf %40, %44 : vector<64x64xf32>
    %c0_17 = arith.constant 0 : index
    %c0_18 = arith.constant 0 : index
    %46 = vector.load %arg6[%c0_17, %c0_18] : memref<64x1xf32, #tpu.memory_space<vmem>>, vector<64x1xf32>
    %cst_19 = arith.constant dense<0xFF800000> : vector<64xf32>
    %47 = vector.multi_reduction <maximumf>, %45, %cst_19 [1] : vector<64x64xf32> to vector<64xf32>
    %48 = vector.shape_cast %47 : vector<64xf32> to vector<64x1xf32>
    %49 = arith.maximumf %46, %48 : vector<64x1xf32>
    %c0_20 = arith.constant 0 : index
    %c0_21 = arith.constant 0 : index
    %50 = vector.load %arg6[%c0_20, %c0_21] : memref<64x1xf32, #tpu.memory_space<vmem>>, vector<64x1xf32>
    tpu.vector_store %arg6[%c0_20, %c0_21], %49 {strides = array<i32>} : memref<64x1xf32, #tpu.memory_space<vmem>>, vector<64x1xf32>,
    %c0_i32_22 = arith.constant 0 : i32
    %51 = arith.cmpi eq, %arg1, %c0_i32_22 : i32
    %52 = arith.extui %51 : i1 to i32
    %c0_i32_23 = arith.constant 0 : i32
    %53 = arith.cmpi ne, %52, %c0_i32_23 : i32
    scf.if %53 {
      %c0_24 = arith.constant 0 : index
      %c0_25 = arith.constant 0 : index
      %54 = vector.load %arg6[%c0_24, %c0_25] : memref<64x1xf32, #tpu.memory_space<vmem>>, vector<64x1xf32>
      %cst_26 = arith.constant dense<0.000000e+00> : vector<1xf32>
      %55 = vector.multi_reduction <add>, %54, %cst_26 [0] : vector<64x1xf32> to vector<1xf32>
      %56 = vector.shape_cast %55 : vector<1xf32> to vector<1x1xf32>
      %cst_27 = arith.constant 1.562500e-02 : f32
      %57 = vector.broadcast %cst_27 : f32 to vector<1x1xf32>
      %58 = arith.mulf %56, %57 : vector<1x1xf32>
      %59 = math.log %58 : vector<1x1xf32>
      %cst_28 = arith.constant 0.000000e+00 : f32
      %60 = vector.broadcast %cst_28 : f32 to vector<1x1xf32>
      %61 = arith.subf %60, %59 : vector<1x1xf32>
      %c0_29 = arith.constant 0 : index
      %c0_30 = arith.constant 0 : index
      %c0_31 = arith.constant 0 : index
      %62 = vector.load %arg4[%c0_29, %c0_30, %c0_31] : memref<1x1x1xf32, #tpu.memory_space<vmem>>, vector<1x1x1xf32>
      %63 = vector.shape_cast %62 : vector<1x1x1xf32> to vector<1x1xf32>
      %64 = vector.shape_cast %61 : vector<1x1xf32> to vector<1x1x1xf32>
      tpu.vector_store %arg4[%c0_29, %c0_30, %c0_31], %64 {strides = array<i32>} : memref<1x1x1xf32, #tpu.memory_space<vmem>>, vector<1x1x1xf32>,
    } else {
    }
    return
  }
  func.func @transform_0(%arg0: i32, %arg1: i32) -> (i32, i32, i32) {
    %c0_i32 = arith.constant 0 : i32
    %c0_i32_0 = arith.constant 0 : i32
    %c0_i32_1 = arith.constant 0 : i32
    return %arg0, %c0_i32, %c0_i32_0 : i32, i32, i32
  }
  func.func @transform_1(%arg0: i32, %arg1: i32) -> (i32, i32, i32) {
    %c0_i32 = arith.constant 0 : i32
    %c0_i32_0 = arith.constant 0 : i32
    return %arg0, %arg1, %c0_i32 : i32, i32, i32
  }
  func.func @transform_2(%arg0: i32, %arg1: i32) -> (i32, i32, i32) {
    %c0_i32 = arith.constant 0 : i32
    %c0_i32_0 = arith.constant 0 : i32
    %c0_i32_1 = arith.constant 0 : i32
    return %arg0, %c0_i32, %c0_i32_0 : i32, i32, i32
  }
}

</mosaic_0001>

<bundles_post_ra>
// kernel: idmrf_loss.3
= control target key start
LH: loop header
LB: loop body
LE: loop exit
PB: predicated region body
PF: predicated region fallthrough
CT: control target
= control target key end

     0   :  { %s736_s9 = smov 0   ;;  %s738_s10 = smov 0   ;;  %s886_s0 = inlined_call_operand.vmem [shape: f32[2,16,512], index: 0, kind: input, shape index: {}]   ;;  %s887_s1 = inlined_call_operand.vmem [shape: f32[2,16,512], index: 1, kind: input, shape index: {}]   ;;  %s888_s2 = inlined_call_operand.vmem [shape: f32[2,1,1], index: 2, kind: output, shape index: {}]  }
   0x1   :  { %s740_s11 = smov 0  }
   0x2 LB: > { %s24_s12 = sadd.s32 1, %s713_s10  ;;  %p620_p0 = scmp.ge.s32.totalorder %s717_s11, 1  ;;  %s717_s11 = sphi %s740_s11, %s12_s11   ;;  %s713_s10 = sphi %s738_s10, %s890_s10   ;;  %s709_s9 = sphi %s736_s9, %s889_s9  }
   0x3   : > { %p26_p1 = scmp.ge.s32.totalorder %s24_s12, 2  ;;  %p142_p2 = scmp.lt.s32.totalorder %s717_s11, 3 }
   0x5   : > { %s892_s12 = smov (%p26_p1, %s24_s12), 0  ;;  %p143_p3 = pnand %p620_p0, %p142_p2 }
   0x6   : > { %p172_p4 = scmp.lt.s32.totalorder (!%p143_p3), %s709_s9, 1 }
   0x7   : > { %146 = sbr.rel (%p143_p3) target bundleno = 679 (0x2a7), region = 28 }
   0xc   : > { %s894_s9 = smov (!%p172_p4, %s709_s9), 1  ;;  %v719_v14 = vmov 512.0   ;;  %vm471_vm13 = vcmask 130048   ;;  %vm285_vm14 = vcmask 7168   ;;  %vm536_vm15 = vcmask 0  }
   0xd   : > { %s643_s13 = sshll.u32 %s894_s9, 6  ;;  %675 = vrcp.f32 %v719_v14  ;;  %s190_s22 = scalar_lea.vmem %s888_s2, %s894_s9 }
   0xe   : > { %s176_s16 = scalar_lea.vmem %s886_s0, %s643_s13  ;;  %s769_s19 = scalar_lea.vmem %s887_s1, %s643_s13 }
   0xf   : > { %v294_v0 = vld [vmem:[%s176_s16] sm:$0xff]  ;;  %v295_v1 = vld [vmem:[%s176_s16 + $0x8] sm:$0xff]  ;;  %v296_v2 = vld [vmem:[%s176_s16 + $0x10] sm:$0xff] }
  0x10   : > { %v302_v3 = vadd.f32 %v295_v1, %v294_v0  ;;  %v298_v4 = vld [vmem:[%s176_s16 + $0x20] sm:$0xff]  ;;  %v299_v5 = vld [vmem:[%s176_s16 + $0x28] sm:$0xff]  ;;  %v297_v6 = vld [vmem:[%s176_s16 + $0x18] sm:$0xff] }
  0x11   : > { %v307_v8 = vadd.f32 %v299_v5, %v298_v4  ;;  %v760_v9 = vld [vmem:[%s176_s16 + $0x30] sm:$0xff]  ;;  %v763_v12 = vld [vmem:[%s176_s16 + $0x38] sm:$0xff]  ;;  %v321_v21 = vld [vmem:[%s769_s19] sm:$0xff] }
  0x12   : > { %v303_v7 = vadd.f32 %v302_v3, %v296_v2  ;;  %v322_v22 = vld [vmem:[%s769_s19 + $0x8] sm:$0xff]  ;;  %v323_v25 = vld [vmem:[%s769_s19 + $0x10] sm:$0xff]  ;;  %v324_v28 = vld [vmem:[%s769_s19 + $0x18] sm:$0xff] }
  0x13   : > { %v308_v11 = vadd.f32 %v307_v8, %v760_v9  ;;  %v676_v15 = vpop.eup %675  ;;  %v325_v43 = vld [vmem:[%s769_s19 + $0x20] sm:$0xff]  ;;  %v326_v44 = vld [vmem:[%s769_s19 + $0x28] sm:$0xff]  ;;  %v327_v53 = vld [vmem:[%s769_s19 + $0x30] sm:$0xff] }
  0x14   : > { %v304_v10 = vadd.f32 %v303_v7, %v297_v6  ;;  %v215_v16 = vmul.f32 512.0, %v676_v15  ;;  %vm219_vm0 = vweird.f32 %v676_v15  ;;  %v328_v54 = vld [vmem:[%s769_s19 + $0x38] sm:$0xff] }
  0x15   : > { %v309_v13 = vadd.f32 %v308_v11, %v763_v12 }
  0x16   : > { %305 = vadd.xlane.f32.xlu1 %v304_v10  ;;  %207 = vadd.xlane.f32.xlu0 %v304_v10  ;;  %v216_v17 = vsub.f32 1.0, %v215_v16 }
  0x18   : > { %v217_v18 = vmul.f32 %v676_v15, %v216_v17 }
  0x1a   : > { %v218_v19 = vadd.f32 %v676_v15, %v217_v18 }
  0x1c   : > { %v220_v20 = vsel %vm219_vm0, %v676_v15, %v218_v19 }
  0x1e   : > { %310 = vadd.xlane.f32.xlu1 %v309_v13  ;;  %212 = vadd.xlane.f32.xlu0 %v309_v13 }
  0x89   : > { %v306_v23 = vpop.xlane.xlu1 %305  ;;  %v208_v24 = vpop.xlane.xlu0 %207 }
  0x8a   : > { %v319_v26 = vmul.f32 %v306_v23, %v220_v20  ;;  %v221_v27 = vmul.f32 %v220_v20, %v208_v24 }
  0x8c   : > { %v775_v29 = vsub.f32 %v321_v21, %v319_v26  ;;  %v777_v30 = vsub.f32 %v322_v22, %v319_v26  ;;  %v779_v31 = vsub.f32 %v323_v25, %v319_v26  ;;  %v781_v32 = vsub.f32 %v324_v28, %v319_v26 }
  0x8d   : > { %v783_v33 = vsub.f32 %v294_v0, %v221_v27  ;;  %v785_v34 = vsub.f32 %v295_v1, %v221_v27  ;;  %v787_v35 = vsub.f32 %v296_v2, %v221_v27  ;;  %v795_v39 = vsub.f32 %v297_v6, %v221_v27 }
  0x8e   : > { %v337_v36 = vmul.f32 %v775_v29, %v775_v29  ;;  %v338_v37 = vmul.f32 %v777_v30, %v777_v30  ;;  %v339_v38 = vmul.f32 %v779_v31, %v779_v31  ;;  %v340_v47 = vmul.f32 %v781_v32, %v781_v32 }
  0x8f   : > { %v231_v40 = vmul.f32 %v783_v33, %v783_v33  ;;  %v232_v41 = vmul.f32 %v785_v34, %v785_v34  ;;  %v233_v48 = vmul.f32 %v787_v35, %v787_v35  ;;  %v234_v55 = vmul.f32 %v795_v39, %v795_v39 }
  0x90   : > { %v345_v42 = vadd.f32 %v338_v37, %v337_v36 }
  0x91   : > { %v311_v45 = vpop.xlane.xlu1 %310  ;;  %v213_v46 = vpop.xlane.xlu0 %212  ;;  %v239_v49 = vadd.f32 %v232_v41, %v231_v40 }
  0x92   : > { %v320_v50 = vmul.f32 %v311_v45, %v220_v20  ;;  %v222_v51 = vmul.f32 %v220_v20, %v213_v46  ;;  %v346_v52 = vadd.f32 %v345_v42, %v339_v38 }
  0x93   : > { %v240_v56 = vadd.f32 %v239_v49, %v233_v48 }
  0x94   : > { %v811_v57 = vsub.f32 %v325_v43, %v320_v50  ;;  %v813_v58 = vsub.f32 %v326_v44, %v320_v50  ;;  %v815_v59 = vsub.f32 %v298_v4, %v222_v51  ;;  %v817_v60 = vsub.f32 %v299_v5, %v222_v51 }
  0x95   : > { %v347_v61 = vadd.f32 %v346_v52, %v340_v47  ;;  %v241_v62 = vadd.f32 %v240_v56, %v234_v55  ;;  %v819_v63 = vsub.f32 %v327_v53, %v320_v50  ;;  %v821_v0 = vsub.f32 %v328_v54, %v320_v50 }
  0x96   : > { %v341_v1 = vmul.f32 %v811_v57, %v811_v57  ;;  %v342_v2 = vmul.f32 %v813_v58, %v813_v58  ;;  %v828_v3 = vsub.f32 %v760_v9, %v222_v51  ;;  %v235_v5 = vmul.f32 %v815_v59, %v815_v59 }
  0x97   : > { %348 = vadd.xlane.f32.xlu0 %v347_v61  ;;  %242 = vadd.xlane.f32.xlu2 %v241_v62  ;;  %v343_v4 = vmul.f32 %v819_v63, %v819_v63  ;;  %v344_v6 = vmul.f32 %v821_v0, %v821_v0  ;;  %v837_v8 = vsub.f32 %v763_v12, %v222_v51 }
  0x98   : > { %v350_v7 = vadd.f32 %v342_v2, %v341_v1  ;;  %v236_v10 = vmul.f32 %v817_v60, %v817_v60  ;;  %v237_v11 = vmul.f32 %v828_v3, %v828_v3 }
  0x99   : > { %v238_v15 = vmul.f32 %v837_v8, %v837_v8 }
  0x9a   : > { %v351_v9 = vadd.f32 %v350_v7, %v343_v4  ;;  %v244_v13 = vadd.f32 %v236_v10, %v235_v5 }
  0x9c   : > { %v352_v14 = vadd.f32 %v351_v9, %v344_v6  ;;  %v245_v16 = vadd.f32 %v244_v13, %v237_v11 }
  0x9e   : > { %353 = vadd.xlane.f32.xlu1 %v352_v14  ;;  %v246_v17 = vadd.f32 %v245_v16, %v238_v15 }
  0xa0   : > { %247 = vadd.xlane.f32.xlu2 %v246_v17 }
 0x10a   : > { %v243_v18 = vpop.xlane.xlu2 %242  ;;  %v349_v19 = vpop.xlane.xlu0 %348 }
 0x10b   : > { %677 = vrsqrt.f32 %v243_v18  ;;  %vm255_vm2 = vweird.f32 %v243_v18  ;;  %vm361_vm5 = vweird.f32 %v349_v19 }
 0x10c   : > { %679 = vrsqrt.f32 %v349_v19 }
 0x111   : > { %v678_v12 = vpop.eup %677  ;;  %v354_v20 = vpop.xlane.xlu1 %353 }
 0x112   : > { %v680_v21 = vpop.eup %679  ;;  %v250_v22 = vmul.f32 %v678_v12, %v243_v18  ;;  %681 = vrsqrt.f32 %v354_v20  ;;  %vm256_vm1 = vweird.f32 %v678_v12  ;;  %vm371_vm8 = vweird.f32 %v354_v20 }
 0x113   : > { %v356_v23 = vmul.f32 %v680_v21, %v349_v19  ;;  %v248_v24 = vpop.xlane.xlu2 %247  ;;  %vm257_vm3 = vmor %vm255_vm2, %vm256_vm1  ;;  %vm362_vm4 = vweird.f32 %v680_v21 }
 0x114   : > { %v251_v25 = vmul.f32 %v678_v12, %v250_v22  ;;  %683 = vrsqrt.f32 %v248_v24  ;;  %vm363_vm6 = vmor %vm361_vm5, %vm362_vm4  ;;  %vm265_vm11 = vweird.f32 %v248_v24 }
 0x115   : > { %v357_v26 = vmul.f32 %v680_v21, %v356_v23 }
 0x116   : > { %v252_v27 = vmul.f32 0.5, %v251_v25 }
 0x117   : > { %v358_v28 = vmul.f32 0.5, %v357_v26 }
 0x118   : > { %v682_v36 = vpop.eup %681  ;;  %v253_v37 = vsub.f32 1.5, %v252_v27 }
 0x119   : > { %v359_v38 = vsub.f32 1.5, %v358_v28  ;;  %v366_v40 = vmul.f32 %v682_v36, %v354_v20  ;;  %vm372_vm7 = vweird.f32 %v682_v36 }
 0x11a   : > { %v684_v41 = vpop.eup %683  ;;  %v254_v42 = vmul.f32 %v678_v12, %v253_v37  ;;  %vm373_vm10 = vmor %vm371_vm8, %vm372_vm7 }
 0x11b   : > { %v367_v43 = vmul.f32 %v682_v36, %v366_v40  ;;  %v260_v44 = vmul.f32 %v684_v41, %v248_v24  ;;  %v360_v46 = vmul.f32 %v680_v21, %v359_v38  ;;  %vm266_vm9 = vweird.f32 %v684_v41 }
 0x11c   : > { %v258_v45 = vsel %vm257_vm3, %v678_v12, %v254_v42  ;;  %vm267_vm12 = vmor %vm265_vm11, %vm266_vm9 }
 0x11d   : > { %v269_v47 = vmul.f32 %v258_v45, %v783_v33  ;;  %v270_v48 = vmul.f32 %v258_v45, %v785_v34  ;;  %v271_v49 = vmul.f32 %v258_v45, %v787_v35  ;;  %v272_v50 = vmul.f32 %v258_v45, %v795_v39 }
 0x11e   : > { %v368_v51 = vmul.f32 0.5, %v367_v43  ;;  %v261_v52 = vmul.f32 %v684_v41, %v260_v44  ;;  %v364_v61 = vsel %vm363_vm6, %v680_v21, %v360_v46 }
 0x11f   : > { %v277_v53 = vpack.c.bf16 %v270_v48, %v269_v47  ;;  %v278_v54 = vpack.c.bf16 %v272_v50, %v271_v49  ;;  %v375_v39 = vmul.f32 %v364_v61, %v775_v29  ;;  %v376_v7 = vmul.f32 %v364_v61, %v777_v30 }
 0x120   : > { %v369_v55 = vsub.f32 1.5, %v368_v51  ;;  %v262_v56 = vmul.f32 0.5, %v261_v52  ;;  %v377_v10 = vmul.f32 %v364_v61, %v779_v31  ;;  %v378_v9 = vmul.f32 %v364_v61, %v781_v32 }
 0x121   : > { %281 = vst [vmem:[#allocation2] sm:$0xff] %v277_v53 }
 0x122   : > { %282 = vst [vmem:[#allocation2 + $0x8] sm:$0xff] %v278_v54  ;;  %v370_v62 = vmul.f32 %v682_v36, %v369_v55  ;;  %v263_v33 = vsub.f32 1.5, %v262_v56 }
 0x124   : > { %v374_v34 = vsel %vm373_vm10, %v682_v36, %v370_v62  ;;  %v264_v35 = vmul.f32 %v684_v41, %v263_v33 }
 0x125   : > { %v379_v1 = vmul.f32 %v374_v34, %v811_v57  ;;  %v380_v2 = vmul.f32 %v374_v34, %v813_v58  ;;  %v381_v4 = vmul.f32 %v374_v34, %v819_v63  ;;  %v382_v5 = vmul.f32 %v374_v34, %v821_v0 }
 0x126   : > { %v268_v6 = vsel %vm267_vm12, %v684_v41, %v264_v35 }
 0x127   : > { %v273_v11 = vmul.f32 %v268_v6, %v815_v59  ;;  %v274_v29 = vmul.f32 %v268_v6, %v817_v60  ;;  %v275_v13 = vmul.f32 %v268_v6, %v828_v3  ;;  %v276_v57 = vmul.f32 %v268_v6, %v837_v8 }
 0x128   : > { %v383_v58 = vpack.c.bf16 %v379_v1, %v375_v39  ;;  %v384_v14 = vpack.c.bf16 %v380_v2, %v376_v7  ;;  %v385_v63 = vpack.c.bf16 %v381_v4, %v377_v10  ;;  %v386_v15 = vpack.c.bf16 %v382_v5, %v378_v9  ;;  %v627_v30 = vld [vmem:[#allocation2] sm:$0xf]  ;;  %v645_v31 = vld [vmem:[#allocation2 + $0x4] sm:$0xf] }
 0x129   : > { %v279_v0 = vpack.c.bf16 %v274_v29, %v273_v11  ;;  %v280_v16 = vpack.c.bf16 %v276_v57, %v275_v13  ;;  %v635_v60 = vld [vmem:[#allocation2 + $0x8] sm:$0xf]  ;;  %v646_v18 = vld [vmem:[#allocation2 + $0xc] sm:$0xf]  ;;  %v720_v5 = vmov -inf  }
 0x12a   : > { %418 = vmatpush.bf16.xpose.msra.mxu0 %v383_v58  ;;  %432 = vmatpush.bf16.xpose.msra.mxu1 %v384_v14  ;;  %287 = vst.msk [vmem:[#allocation3 + $0x8] sm:$0xff] %vm285_vm14, %v720_v5 }
 0x12b   : > { %283 = vst [vmem:[#allocation2 + $0x10] sm:$0xff] %v279_v0  ;;  %446 = vmatpush.bf16.xpose.msra.mxu2 %v385_v63  ;;  %460 = vmatpush.bf16.xpose.msra.mxu3 %v386_v15 }
 0x12c   : > { %284 = vst [vmem:[#allocation2 + $0x18] sm:$0xff] %v280_v16 }
 0x12d   : > { %286 = vst.msk [vmem:[#allocation3] sm:$0xff] %vm285_vm14, %v720_v5 }
 0x132   : > { %v647_v32 = vld [vmem:[#allocation2 + $0xc] sm:$0xf0]  ;;  %v629_v59 = vld [vmem:[#allocation2 + $0x10] sm:$0xf0] }
 0x133   : > { %v628_v3 = vor.u32 %v647_v32, %v627_v30  ;;  %v632_v17 = vor.u32 %v645_v31, %v629_v59  ;;  %v648_v8 = vld [vmem:[#allocation2 + $0x14] sm:$0xf0]  ;;  %v637_v19 = vld [vmem:[#allocation2 + $0x18] sm:$0xf0]  ;;  %v506_v32 = vld [vmem:[#allocation3 + $0x8] sm:$0xff] }
 0x134   : > { %v636_v12 = vor.u32 %v648_v8, %v635_v60  ;;  %v640_v20 = vor.u32 %v646_v18, %v637_v19  ;;  %v505_v59 = vld [vmem:[#allocation3] sm:$0xff] }
 0x135   : > { %419 = vmatmul.bf16.vlgmr.msra.gmra.mxu0 %v628_v3  ;;  %433 = vmatmul.bf16.vlgmr.msra.gmra.mxu1 %v632_v17 }
 0x136   : > { %447 = vmatmul.bf16.vlgmr.msra.gmra.mxu2 %v636_v12  ;;  %461 = vmatmul.bf16.vlgmr.msra.gmra.mxu3 %v640_v20 }
 0x1b2   : > { %v420_v21 = vpop.f32.mrf.mxu0  ;;  %v434_v22 = vpop.f32.mrf.mxu1 }
 0x1b3   : > { %v435_v23 = vadd.f32 %v434_v22, %v420_v21 }
 0x1b9   : > { %v448_v24 = vpop.f32.mrf.mxu2  ;;  %v462_v25 = vpop.f32.mrf.mxu3 }
 0x1ba   : > { %v449_v26 = vadd.f32 %v448_v24, %v435_v23  ;;  %v422_v27 = vpop.f32.mrf.mxu0  ;;  %v436_v28 = vpop.f32.mrf.mxu1 }
 0x1bb   : > { %v437_v37 = vadd.f32 %v436_v28, %v422_v27 }
 0x1bc   : > { %v463_v36 = vadd.f32 %v462_v25, %v449_v26 }
 0x1be   : > { %v467_v40 = vsub.f32 1.0, %v463_v36 }
 0x1c0   : > { %v469_v44 = vmul.f32 0.5, %v467_v40 }
 0x1c1   : > { %v450_v38 = vpop.f32.mrf.mxu2  ;;  %v464_v42 = vpop.f32.mrf.mxu3 }
 0x1c2   : > { %v451_v41 = vadd.f32 %v450_v38, %v437_v37  ;;  %v472_v47 = vsel %vm471_vm13, %v469_v44, inf }
 0x1c4   : > { %v465_v43 = vadd.f32 %v464_v42, %v451_v41 }
 0x1c6   : > { %v468_v45 = vsub.f32 1.0, %v465_v43 }
 0x1c8   : > { %v470_v46 = vmul.f32 0.5, %v468_v45 }
 0x1ca   : > { %v473_v48 = vsel %vm471_vm13, %v470_v46, inf }
 0x1cb   : > { %v474_v49 = vmin.f32 %v472_v47, %v473_v48 }
 0x1cd   : > { %v475_v50 = vrot.slane %v474_v49, 4 }
 0x1cf   : > { %v476_v51 = vmin.f32 %v474_v49, %v475_v50 }
 0x1d1   : > { %v477_v52 = vrot.slane %v476_v51, 2 }
 0x1d3   : > { %v478_v53 = vmin.f32 %v476_v51, %v477_v52 }
 0x1d5   : > { %v479_v54 = vrot.slane %v478_v53, 1 }
 0x1d7   : > { %v480_v55 = vmin.f32 %v478_v53, %v479_v54 }
 0x1d9   : > { %v481_v56 = vadd.f32 1e-05, %v480_v55 }
 0x1db   : > { %685 = vrcp.f32 %v481_v56 }
 0x1e1   : > { %v686_v61 = vpop.eup %685 }
 0x1e2   : > { %v483_v62 = vmul.f32 %v686_v61, %v469_v44  ;;  %v484_v33 = vmul.f32 %v686_v61, %v470_v46 }
 0x1e4   : > { %v485_v34 = vsub.f32 1.0, %v483_v62  ;;  %v486_v35 = vsub.f32 1.0, %v484_v33 }
 0x1e6   : > { %v487_v39 = vmul.f32 2.0, %v485_v34  ;;  %v488_v1 = vmul.f32 2.0, %v486_v35 }
 0x1e8   : > { %v489_v2 = vmul.f32 1.442695, %v487_v39  ;;  %v491_v4 = vmul.f32 1.442695, %v488_v1 }
 0x1ea   : > { %687 = vpow2.f32 %v489_v2 }
 0x1eb   : > { %689 = vpow2.f32 %v491_v4 }
 0x1f0   : > { %v688_v6 = vpop.eup %687 }
 0x1f1   : > { %v690_v7 = vpop.eup %689  ;;  %v493_v10 = vsel %vm471_vm13, %v688_v6, 0.0 }
 0x1f2   : > { %v494_v9 = vsel %vm471_vm13, %v690_v7, 0.0 }
 0x1f3   : > { %v495_v11 = vadd.f32 %v494_v9, %v493_v10 }
 0x1f5   : > { %v496_v29 = vrot.slane %v495_v11, 4 }
 0x1f7   : > { %v497_v13 = vadd.f32 %v496_v29, %v495_v11 }
 0x1f9   : > { %v498_v57 = vrot.slane %v497_v13, 2 }
 0x1fb   : > { %v499_v58 = vadd.f32 %v498_v57, %v497_v13 }
 0x1fd   : > { %v500_v14 = vrot.slane %v499_v58, 1 }
 0x1ff   : > { %v501_v63 = vadd.f32 %v500_v14, %v499_v58 }
 0x201   : > { %691 = vrcp.f32 %v501_v63 }
 0x207   : > { %v692_v15 = vpop.eup %691 }
 0x208   : > { %v504_v0 = vmul.f32 %v692_v15, %v690_v7  ;;  %v503_v16 = vmul.f32 %v692_v15, %v688_v6 }
 0x20a   : > { %v510_v30 = vsel %vm471_vm13, %v504_v0, -inf  ;;  %v507_v31 = vsel %vm471_vm13, %v503_v16, -inf }
 0x20b   : > { %511 = vmax.xlane.f32.xlu0 %v510_v30  ;;  %508 = vmax.xlane.f32.xlu2 %v507_v31 }
 0x27e   : > { %v512_v60 = vpop.xlane.xlu0 %511  ;;  %v509_v3 = vpop.xlane.xlu2 %508 }
 0x27f   : > { %v514_v17 = vmax.f32 %v506_v32, %v512_v60  ;;  %v513_v8 = vmax.f32 %v505_v59, %v509_v3 }
 0x281   : > { %517 = vst.msk [vmem:[#allocation3 + $0x8] sm:$0xff] %vm285_vm14, %v514_v17 }
 0x282   : > { %516 = vst.msk [vmem:[#allocation3] sm:$0xff] %vm285_vm14, %v513_v8 }
 0x288   : > { %v522_v18 = vld [vmem:[#allocation3 + $0x8] sm:$0xff] }
 0x289   : > { %v524_v19 = vsel %vm285_vm14, %v522_v18, 0.0  ;;  %v521_v12 = vld [vmem:[#allocation3] sm:$0xff] }
 0x28a   : > { %v523_v20 = vsel %vm285_vm14, %v521_v12, 0.0 }
 0x28b   : > { %v525_v21 = vadd.f32 %v524_v19, %v523_v20 }
 0x28d   : > { %v526_v22 = vrot.slane %v525_v21, 4 }
 0x28f   : > { %v527_v23 = vadd.f32 %v526_v22, %v525_v21 }
 0x291   : > { %v528_v24 = vrot.slane %v527_v23, 2 }
 0x293   : > { %v529_v25 = vadd.f32 %v528_v24, %v527_v23 }
 0x295   : > { %v530_v26 = vrot.slane %v529_v25, 1 }
 0x297   : > { %v531_v27 = vadd.f32 %v530_v26, %v529_v25 }
 0x299   : > { %v532_v28 = vmul.f32 0.0625, %v531_v27 }
 0x29b   : > { %693 = vlog2.f32 %v532_v28 }
 0x2a1   : > { %v694_v36 = vpop.eup %693 }
 0x2a2   : > { %v534_v37 = vmul.f32 0.6931472, %v694_v36 }
 0x2a4   : > { %v535_v38 = vsub.f32 0.0, %v534_v37 }
 0x2a6   : > { %537 = vst.msk [vmem:[%s190_s22] sm:$0x1] %vm536_vm15, %v535_v38 }
 0x2a7 PF: > { %s12_s11 = sadd.s32 1, %s717_s11   ;;  %s889_s9 = smov %s713_s10 }
 0x2a8   : > { %p9_p5 = scmp.ge.s32.totalorder %s12_s11, 4   ;;  %s890_s10 = smov %s892_s12 }
 0x2aa   :  { %11 = sbr.rel (!%p9_p5) target bundleno = 2 (0x2), region = 70 }

// kernel: idmrf_loss.2
= control target key start
LH: loop header
LB: loop body
LE: loop exit
PB: predicated region body
PF: predicated region fallthrough
CT: control target
= control target key end

     0   :  { %s1230_s9 = smov 0   ;;  %s1232_s10 = smov 0   ;;  %s1836_s0 = inlined_call_operand.vmem [shape: f32[2,64,256], index: 0, kind: input, shape index: {}]   ;;  %s1837_s1 = inlined_call_operand.vmem [shape: f32[2,64,256], index: 1, kind: input, shape index: {}]   ;;  %s1838_s2 = inlined_call_operand.vmem [shape: f32[2,1,1], index: 2, kind: output, shape index: {}]  }
   0x1   :  { %s1234_s11 = smov 0  }
   0x2 LB: > { %s24_s12 = sadd.s32 1, %s1207_s10  ;;  %p1050_p0 = scmp.ge.s32.totalorder %s1211_s11, 1  ;;  %s1211_s11 = sphi %s1234_s11, %s12_s11   ;;  %s1207_s10 = sphi %s1232_s10, %s1844_s10   ;;  %s1203_s9 = sphi %s1230_s9, %s1843_s9  }
   0x3   : > { %p26_p1 = scmp.ge.s32.totalorder %s24_s12, 2  ;;  %p142_p2 = scmp.lt.s32.totalorder %s1211_s11, 3 }
   0x5   : > { %s1846_s12 = smov (%p26_p1, %s24_s12), 0  ;;  %p143_p3 = pnand %p1050_p0, %p142_p2 }
   0x6   : > { %p172_p4 = scmp.lt.s32.totalorder (!%p143_p3), %s1203_s9, 1 }
   0x7   : > { %146 = sbr.rel (%p143_p3) target bundleno = 741 (0x2e5), region = 28 }
   0xc   : > { %s1848_s9 = smov (!%p172_p4, %s1203_s9), 1  ;;  %v1213_v24 = vmov 256.0  }
   0xd   : > { %s1089_s13 = sshll.u32 %s1848_s9, 7  ;;  %1133 = vrcp.f32 %v1213_v24  ;;  %s190_s22 = scalar_lea.vmem %s1838_s2, %s1848_s9 }
   0xe   : > { %s1256_s16 = scalar_lea.vmem %s1836_s0, %s1089_s13  ;;  %s1327_s19 = scalar_lea.vmem %s1837_s1, %s1089_s13 }
   0xf   : > { %v1259_v0 = vld [vmem:[%s1256_s16 + $0x60] sm:$0xff]  ;;  %v1262_v1 = vld [vmem:[%s1256_s16 + $0x68] sm:$0xff]  ;;  %v1283_v9 = vld [vmem:[%s1256_s16 + $0x70] sm:$0xff] }
  0x10   : > { %v1265_v2 = vld [vmem:[%s1256_s16 + $0x40] sm:$0xff]  ;;  %v468_v3 = vadd.f32 %v1262_v1, %v1259_v0  ;;  %v1270_v4 = vld [vmem:[%s1256_s16 + $0x48] sm:$0xff]  ;;  %v1286_v10 = vld [vmem:[%s1256_s16 + $0x78] sm:$0xff] }
  0x11   : > { %v1273_v5 = vld [vmem:[%s1256_s16 + $0x20] sm:$0xff]  ;;  %v1276_v6 = vld [vmem:[%s1256_s16 + $0x28] sm:$0xff]  ;;  %v462_v7 = vadd.f32 %v1270_v4, %v1265_v2  ;;  %v1289_v11 = vld [vmem:[%s1256_s16 + $0x50] sm:$0xff]  ;;  %v471_v15 = vadd.f32 %v1286_v10, %v1283_v9 }
  0x12   : > { %v456_v8 = vadd.f32 %v1276_v6, %v1273_v5  ;;  %469 = vadd.xlane.f32.xlu0 %v468_v3  ;;  %v1292_v12 = vld [vmem:[%s1256_s16 + $0x58] sm:$0xff]  ;;  %v1295_v13 = vld [vmem:[%s1256_s16 + $0x30] sm:$0xff]  ;;  %v1307_v18 = vld [vmem:[%s1256_s16] sm:$0xff] }
  0x13   : > { %463 = vadd.xlane.f32.xlu1 %v462_v7  ;;  %v1298_v14 = vld [vmem:[%s1256_s16 + $0x38] sm:$0xff]  ;;  %v465_v16 = vadd.f32 %v1292_v12, %v1289_v11  ;;  %v1310_v19 = vld [vmem:[%s1256_s16 + $0x8] sm:$0xff]  ;;  %v1315_v21 = vld [vmem:[%s1256_s16 + $0x10] sm:$0xff]  ;;  %v1134_v25 = vpop.eup %1133 }
  0x14   : > { %457 = vadd.xlane.f32.xlu2 %v456_v8  ;;  %v459_v17 = vadd.f32 %v1298_v14, %v1295_v13  ;;  %v450_v20 = vadd.f32 %v1310_v19, %v1307_v18  ;;  %v1318_v22 = vld [vmem:[%s1256_s16 + $0x18] sm:$0xff]  ;;  %v237_v26 = vmul.f32 256.0, %v1134_v25  ;;  %vm241_vm0 = vweird.f32 %v1134_v25  ;;  %v501_v31 = vld [vmem:[%s1327_s19 + $0x60] sm:$0xff]  ;;  %v502_v32 = vld [vmem:[%s1327_s19 + $0x68] sm:$0xff] }
  0x15   : > { %v453_v23 = vadd.f32 %v1318_v22, %v1315_v21  ;;  %v497_v35 = vld [vmem:[%s1327_s19 + $0x40] sm:$0xff]  ;;  %v498_v36 = vld [vmem:[%s1327_s19 + $0x48] sm:$0xff]  ;;  %v503_v49 = vld [vmem:[%s1327_s19 + $0x70] sm:$0xff] }
  0x16   : > { %v238_v27 = vsub.f32 1.0, %v237_v26  ;;  %v504_v50 = vld [vmem:[%s1327_s19 + $0x78] sm:$0xff]  ;;  %v499_v52 = vld [vmem:[%s1327_s19 + $0x50] sm:$0xff] }
  0x17   : > { %v500_v55 = vld [vmem:[%s1327_s19 + $0x58] sm:$0xff]  ;;  %v495_v57 = vld [vmem:[%s1327_s19 + $0x30] sm:$0xff] }
  0x18   : > { %v239_v28 = vmul.f32 %v1134_v25, %v238_v27  ;;  %v496_v58 = vld [vmem:[%s1327_s19 + $0x38] sm:$0xff] }
  0x1a   : > { %472 = vadd.xlane.f32.xlu0 %v471_v15  ;;  %v240_v29 = vadd.f32 %v1134_v25, %v239_v28 }
  0x1b   : > { %466 = vadd.xlane.f32.xlu1 %v465_v16 }
  0x1c   : > { %460 = vadd.xlane.f32.xlu2 %v459_v17  ;;  %v1329_v30 = vsel %vm241_vm0, %v1134_v25, %v240_v29 }
  0x22   : > { %225 = vadd.xlane.f32.xlu0 %v462_v7  ;;  %v493_v7 = vld [vmem:[%s1327_s19 + $0x20] sm:$0xff] }
  0x23   : > { %228 = vadd.xlane.f32.xlu1 %v465_v16 }
  0x24   : > { %451 = vadd.xlane.f32.xlu2 %v450_v20 }
  0x2a   : > { %454 = vadd.xlane.f32.xlu0 %v453_v23 }
  0x2b   : > { %213 = vadd.xlane.f32.xlu1 %v450_v20 }
  0x2c   : > { %216 = vadd.xlane.f32.xlu2 %v453_v23 }
  0x32   : > { %231 = vadd.xlane.f32.xlu0 %v468_v3 }
  0x33   : > { %234 = vadd.xlane.f32.xlu1 %v471_v15 }
  0x34   : > { %219 = vadd.xlane.f32.xlu2 %v456_v8  ;;  %v494_v8 = vld [vmem:[%s1327_s19 + $0x28] sm:$0xff] }
  0x3a   : > { %222 = vadd.xlane.f32.xlu0 %v459_v17 }
  0x85   : > { %v470_v33 = vpop.xlane.xlu0 %469 }
  0x86   : > { %v487_v34 = vmul.f32 %v470_v33, %v1329_v30  ;;  %v464_v37 = vpop.xlane.xlu1 %463 }
  0x87   : > { %v458_v38 = vpop.xlane.xlu2 %457  ;;  %v485_v39 = vmul.f32 %v464_v37, %v1329_v30  ;;  %v490_v37 = vld [vmem:[%s1327_s19 + $0x8] sm:$0xff] }
  0x88   : > { %v1337_v40 = vsub.f32 %v501_v31, %v487_v34  ;;  %v1339_v41 = vsub.f32 %v502_v32, %v487_v34  ;;  %v483_v62 = vmul.f32 %v458_v38, %v1329_v30 }
  0x89   : > { %v1341_v42 = vsub.f32 %v497_v35, %v485_v39  ;;  %v1343_v43 = vsub.f32 %v498_v36, %v485_v39  ;;  %v489_v36 = vld [vmem:[%s1327_s19] sm:$0xff] }
  0x8a   : > { %v533_v44 = vmul.f32 %v1337_v40, %v1337_v40  ;;  %v534_v45 = vmul.f32 %v1339_v41, %v1339_v41  ;;  %v1389_v29 = vsub.f32 %v493_v7, %v483_v62  ;;  %v1391_v31 = vsub.f32 %v494_v8, %v483_v62 }
  0x8b   : > { %v529_v46 = vmul.f32 %v1341_v42, %v1341_v42  ;;  %v530_v47 = vmul.f32 %v1343_v43, %v1343_v43 }
  0x8c   : > { %v555_v48 = vadd.f32 %v534_v45, %v533_v44 }
  0x8d   : > { %v473_v51 = vpop.xlane.xlu0 %472  ;;  %v549_v53 = vadd.f32 %v530_v47, %v529_v46 }
  0x8e   : > { %v488_v54 = vmul.f32 %v473_v51, %v1329_v30  ;;  %v467_v56 = vpop.xlane.xlu1 %466  ;;  %556 = vadd.xlane.f32.xlu1 %v555_v48 }
  0x8f   : > { %v461_v59 = vpop.xlane.xlu2 %460  ;;  %v486_v60 = vmul.f32 %v467_v56, %v1329_v30  ;;  %550 = vadd.xlane.f32.xlu0 %v549_v53 }
  0x90   : > { %v484_v61 = vmul.f32 %v461_v59, %v1329_v30  ;;  %v1363_v63 = vsub.f32 %v503_v49, %v488_v54  ;;  %v1365_v3 = vsub.f32 %v504_v50, %v488_v54  ;;  %v525_v49 = vmul.f32 %v1389_v29, %v1389_v29  ;;  %v491_v59 = vld [vmem:[%s1327_s19 + $0x10] sm:$0xff] }
  0x91   : > { %v1369_v15 = vsub.f32 %v499_v52, %v486_v60  ;;  %v1371_v16 = vsub.f32 %v500_v55, %v486_v60  ;;  %v526_v50 = vmul.f32 %v1391_v31, %v1391_v31 }
  0x92   : > { %v1373_v17 = vsub.f32 %v495_v57, %v484_v61  ;;  %v1375_v20 = vsub.f32 %v496_v58, %v484_v61  ;;  %v535_v23 = vmul.f32 %v1363_v63, %v1363_v63  ;;  %v536_v24 = vmul.f32 %v1365_v3, %v1365_v3 }
  0x93   : > { %v531_v27 = vmul.f32 %v1369_v15, %v1369_v15  ;;  %v532_v28 = vmul.f32 %v1371_v16, %v1371_v16  ;;  %v543_v57 = vadd.f32 %v526_v50, %v525_v49 }
  0x94   : > { %v527_v25 = vmul.f32 %v1373_v17, %v1373_v17  ;;  %v528_v26 = vmul.f32 %v1375_v20, %v1375_v20  ;;  %v558_v32 = vadd.f32 %v536_v24, %v535_v23 }
  0x95   : > { %v226_v33 = vpop.xlane.xlu0 %225  ;;  %v552_v35 = vadd.f32 %v532_v28, %v531_v27 }
  0x96   : > { %v546_v34 = vadd.f32 %v528_v26, %v527_v25  ;;  %v247_v39 = vmul.f32 %v1329_v30, %v226_v33  ;;  %559 = vadd.xlane.f32.xlu2 %v558_v32  ;;  %v229_v44 = vpop.xlane.xlu1 %228 }
  0x97   : > { %v452_v38 = vpop.xlane.xlu2 %451  ;;  %553 = vadd.xlane.f32.xlu1 %v552_v35  ;;  %v248_v46 = vmul.f32 %v1329_v30, %v229_v44 }
  0x98   : > { %v481_v45 = vmul.f32 %v452_v38, %v1329_v30  ;;  %547 = vadd.xlane.f32.xlu0 %v546_v34  ;;  %v1399_v47 = vsub.f32 %v1265_v2, %v247_v39  ;;  %v1402_v48 = vsub.f32 %v1270_v4, %v247_v39 }
  0x99   : > { %v1413_v53 = vsub.f32 %v1289_v11, %v248_v46  ;;  %v1416_v54 = vsub.f32 %v1292_v12, %v248_v46  ;;  %v492_v11 = vld [vmem:[%s1327_s19 + $0x18] sm:$0xff] }
  0x9a   : > { %v1408_v51 = vsub.f32 %v489_v36, %v481_v45  ;;  %v1410_v52 = vsub.f32 %v490_v37, %v481_v45  ;;  %v275_v2 = vmul.f32 %v1399_v47, %v1399_v47  ;;  %v276_v4 = vmul.f32 %v1402_v48, %v1402_v48 }
  0x9b   : > { %v277_v8 = vmul.f32 %v1413_v53, %v1413_v53  ;;  %v278_v23 = vmul.f32 %v1416_v54, %v1416_v54 }
  0x9c   : > { %v521_v55 = vmul.f32 %v1408_v51, %v1408_v51  ;;  %v522_v56 = vmul.f32 %v1410_v52, %v1410_v52  ;;  %v295_v58 = vadd.f32 %v276_v4, %v275_v2 }
  0x9d   : > { %v455_v60 = vpop.xlane.xlu0 %454  ;;  %v298_v35 = vadd.f32 %v278_v23, %v277_v8 }
  0x9e   : > { %v537_v61 = vadd.f32 %v522_v56, %v521_v55  ;;  %v482_v12 = vmul.f32 %v455_v60, %v1329_v30  ;;  %544 = vadd.xlane.f32.xlu2 %v543_v57  ;;  %v214_v7 = vpop.xlane.xlu1 %213 }
  0x9f   : > { %v217_v62 = vpop.xlane.xlu2 %216  ;;  %296 = vadd.xlane.f32.xlu1 %v295_v58  ;;  %v243_v25 = vmul.f32 %v1329_v30, %v214_v7 }
  0xa0   : > { %v244_v24 = vmul.f32 %v1329_v30, %v217_v62  ;;  %538 = vadd.xlane.f32.xlu0 %v537_v61  ;;  %v1435_v26 = vsub.f32 %v491_v59, %v482_v12  ;;  %v1437_v27 = vsub.f32 %v492_v11, %v482_v12 }
  0xa1   : > { %v1446_v33 = vsub.f32 %v1307_v18, %v243_v25  ;;  %v1449_v34 = vsub.f32 %v1310_v19, %v243_v25 }
  0xa2   : > { %v1440_v28 = vsub.f32 %v1315_v21, %v244_v24  ;;  %v1443_v32 = vsub.f32 %v1318_v22, %v244_v24  ;;  %v523_v36 = vmul.f32 %v1435_v26, %v1435_v26  ;;  %v524_v37 = vmul.f32 %v1437_v27, %v1437_v27 }
  0xa3   : > { %v267_v19 = vmul.f32 %v1446_v33, %v1446_v33  ;;  %v268_v44 = vmul.f32 %v1449_v34, %v1449_v34 }
  0xa4   : > { %v269_v21 = vmul.f32 %v1440_v28, %v1440_v28  ;;  %v270_v22 = vmul.f32 %v1443_v32, %v1443_v32  ;;  %v540_v38 = vadd.f32 %v524_v37, %v523_v36 }
  0xa5   : > { %v232_v39 = vpop.xlane.xlu0 %231  ;;  %v283_v58 = vadd.f32 %v268_v44, %v267_v19 }
  0xa6   : > { %v286_v18 = vadd.f32 %v270_v22, %v269_v21  ;;  %v249_v45 = vmul.f32 %v1329_v30, %v232_v39  ;;  %299 = vadd.xlane.f32.xlu2 %v298_v35  ;;  %v235_v49 = vpop.xlane.xlu1 %234 }
  0xa7   : > { %v220_v46 = vpop.xlane.xlu2 %219  ;;  %541 = vadd.xlane.f32.xlu1 %v540_v38  ;;  %v250_v2 = vmul.f32 %v1329_v30, %v235_v49 }
  0xa8   : > { %v245_v50 = vmul.f32 %v1329_v30, %v220_v46  ;;  %287 = vadd.xlane.f32.xlu0 %v286_v18  ;;  %v1467_v4 = vsub.f32 %v1259_v0, %v249_v45  ;;  %v1470_v55 = vsub.f32 %v1262_v1, %v249_v45 }
  0xa9   : > { %v1479_v59 = vsub.f32 %v1283_v9, %v250_v2  ;;  %v1482_v11 = vsub.f32 %v1286_v10, %v250_v2 }
  0xaa   : > { %v1473_v56 = vsub.f32 %v1273_v5, %v245_v50  ;;  %v1476_v57 = vsub.f32 %v1276_v6, %v245_v50  ;;  %v279_v0 = vmul.f32 %v1467_v4, %v1467_v4  ;;  %v280_v1 = vmul.f32 %v1470_v55, %v1470_v55 }
  0xab   : > { %v281_v10 = vmul.f32 %v1479_v59, %v1479_v59  ;;  %v282_v62 = vmul.f32 %v1482_v11, %v1482_v11 }
  0xac   : > { %v271_v5 = vmul.f32 %v1473_v56, %v1473_v56  ;;  %v272_v6 = vmul.f32 %v1476_v57, %v1476_v57  ;;  %v301_v60 = vadd.f32 %v280_v1, %v279_v0 }
  0xad   : > { %v223_v61 = vpop.xlane.xlu0 %222  ;;  %v304_v24 = vadd.f32 %v282_v62, %v281_v10 }
  0xae   : > { %v289_v12 = vadd.f32 %v272_v6, %v271_v5  ;;  %v246_v9 = vmul.f32 %v1329_v30, %v223_v61  ;;  %284 = vadd.xlane.f32.xlu2 %v283_v58 }
  0xaf   : > { %302 = vadd.xlane.f32.xlu1 %v301_v60 }
  0xb0   : > { %290 = vadd.xlane.f32.xlu0 %v289_v12  ;;  %v1498_v7 = vsub.f32 %v1295_v13, %v246_v9  ;;  %v1501_v8 = vsub.f32 %v1298_v14, %v246_v9 }
  0xb2   : > { %v273_v23 = vmul.f32 %v1498_v7, %v1498_v7  ;;  %v274_v30 = vmul.f32 %v1501_v8, %v1501_v8 }
  0xb4   : > { %v292_v25 = vadd.f32 %v274_v30, %v273_v23 }
  0xb6   : > { %305 = vadd.xlane.f32.xlu2 %v304_v24 }
  0xb7   : > { %293 = vadd.xlane.f32.xlu1 %v292_v25 }
 0x101   : > { %v557_v35 = vpop.xlane.xlu1 %556 }
 0x102   : > { %v551_v36 = vpop.xlane.xlu0 %550  ;;  %1135 = vrsqrt.f32 %v557_v35  ;;  %vm627_vm4 = vweird.f32 %v557_v35 }
 0x103   : > { %1137 = vrsqrt.f32 %v551_v36  ;;  %vm607_vm2 = vweird.f32 %v551_v36 }
 0x108   : > { %v1136_v37 = vpop.eup %1135 }
 0x109   : > { %v1507_v13 = vpop.eup %1137  ;;  %v622_v21 = vmul.f32 %v1136_v37, %v557_v35  ;;  %v1509_v14 = vpop.xlane.xlu2 %559  ;;  %vm628_vm1 = vweird.f32 %v1136_v37 }
 0x10a   : > { %v602_v22 = vmul.f32 %v1507_v13, %v551_v36  ;;  %1139 = vrsqrt.f32 %v1509_v14  ;;  %v1515_v39 = vpop.xlane.xlu1 %553  ;;  %vm608_vm3 = vweird.f32 %v1507_v13  ;;  %vm637_vm5 = vweird.f32 %v1509_v14  ;;  %vm629_vm6 = vmor %vm627_vm4, %vm628_vm1 }
 0x10b   : > { %v1512_v38 = vpop.xlane.xlu0 %547  ;;  %v623_v18 = vmul.f32 %v1136_v37, %v622_v21  ;;  %vm617_vm10 = vweird.f32 %v1515_v39  ;;  %vm609_vm11 = vmor %vm607_vm2, %vm608_vm3 }
 0x10c   : > { %1141 = vrsqrt.f32 %v1512_v38  ;;  %v603_v19 = vmul.f32 %v1507_v13, %v602_v22  ;;  %vm597_vm7 = vweird.f32 %v1512_v38 }
 0x10d   : > { %1143 = vrsqrt.f32 %v1515_v39  ;;  %v624_v44 = vmul.f32 0.5, %v623_v18 }
 0x10e   : > { %v604_v45 = vmul.f32 0.5, %v603_v19 }
 0x10f   : > { %v625_v50 = vsub.f32 1.5, %v624_v44 }
 0x110   : > { %v1520_v46 = vpop.eup %1139  ;;  %v605_v60 = vsub.f32 1.5, %v604_v45 }
 0x111   : > { %v632_v2 = vmul.f32 %v1520_v46, %v1509_v14  ;;  %v1526_v58 = vpop.xlane.xlu2 %544  ;;  %v626_v10 = vmul.f32 %v1136_v37, %v625_v50  ;;  %vm638_vm9 = vweird.f32 %v1520_v46 }
 0x112   : > { %v1522_v49 = vpop.eup %1141  ;;  %1145 = vrsqrt.f32 %v1526_v58  ;;  %v1535_v6 = vpop.xlane.xlu1 %296  ;;  %v606_v24 = vmul.f32 %v1507_v13, %v605_v60  ;;  %vm639_vm14 = vmor %vm637_vm5, %vm638_vm9  ;;  %vm587_vm0 = vweird.f32 %v1526_v58 }
 0x113   : > { %v1528_v0 = vpop.eup %1143  ;;  %v592_v1 = vmul.f32 %v1522_v49, %v1512_v38  ;;  %v1532_v5 = vpop.xlane.xlu0 %538  ;;  %v633_v61 = vmul.f32 %v1520_v46, %v632_v2  ;;  %vm598_vm8 = vweird.f32 %v1522_v49  ;;  %v630_v50 = vsel %vm629_vm6, %v1136_v37, %v626_v10 }
 0x114   : > { %v612_v12 = vmul.f32 %v1528_v0, %v1515_v39  ;;  %1147 = vrsqrt.f32 %v1532_v5  ;;  %vm618_vm12 = vweird.f32 %v1528_v0  ;;  %v610_v10 = vsel %vm609_vm11, %v1507_v13, %v606_v24  ;;  %vm599_vm1 = vmor %vm597_vm7, %vm598_vm8 }
 0x115   : > { %v593_v9 = vmul.f32 %v1522_v49, %v592_v1  ;;  %1149 = vrsqrt.f32 %v1535_v6  ;;  %v634_v62 = vmul.f32 0.5, %v633_v61  ;;  %vm353_vm13 = vweird.f32 %v1535_v6  ;;  %vm619_vm15 = vmor %vm617_vm10, %vm618_vm12 }
 0x116   : > { %v613_v23 = vmul.f32 %v1528_v0, %v612_v12  ;;  %v654_v24 = vmul.f32 %v630_v50, %v1339_v41  ;;  %v1597_v14 = vmul.f32 %v610_v10, %v1341_v42  ;;  %v650_v41 = vmul.f32 %v610_v10, %v1343_v43 }
 0x117   : > { %v594_v30 = vmul.f32 0.5, %v593_v9  ;;  %v635_v25 = vsub.f32 1.5, %v634_v62  ;;  %vm567_vm7 = vweird.f32 %v1532_v5 }
 0x118   : > { %v614_v21 = vmul.f32 0.5, %v613_v23  ;;  %v1547_v22 = vpop.eup %1145  ;;  %v653_v23 = vmul.f32 %v630_v50, %v1337_v40 }
 0x119   : > { %v595_v35 = vsub.f32 1.5, %v594_v30  ;;  %v582_v44 = vmul.f32 %v1547_v22, %v1526_v58  ;;  %v1557_v45 = vpop.xlane.xlu2 %299  ;;  %v636_v1 = vmul.f32 %v1520_v46, %v635_v25  ;;  %vm588_vm2 = vweird.f32 %v1547_v22 }
 0x11a   : > { %v1553_v18 = vpop.eup %1147  ;;  %v615_v19 = vsub.f32 1.5, %v614_v21  ;;  %1151 = vrsqrt.f32 %v1557_v45  ;;  %v1571_v12 = vpop.xlane.xlu1 %541  ;;  %vm363_vm5 = vweird.f32 %v1557_v45  ;;  %vm589_vm11 = vmor %vm587_vm0, %vm588_vm2 }
 0x11b   : > { %v1559_v2 = vpop.eup %1149  ;;  %v562_v60 = vmul.f32 %v1553_v18, %v1532_v5  ;;  %v1568_v61 = vpop.xlane.xlu0 %287  ;;  %v583_v9 = vmul.f32 %v1547_v22, %v582_v44  ;;  %v596_v30 = vmul.f32 %v1522_v49, %v595_v35  ;;  %v640_v40 = vsel %vm639_vm14, %v1520_v46, %v636_v1 }
 0x11c   : > { %v616_v37 = vmul.f32 %v1528_v0, %v615_v19  ;;  %v348_v36 = vmul.f32 %v1559_v2, %v1535_v6  ;;  %1153 = vrsqrt.f32 %v1568_v61  ;;  %v655_v19 = vmul.f32 %v640_v40, %v1363_v63 }
 0x11d   : > { %v563_v62 = vmul.f32 %v1553_v18, %v562_v60  ;;  %v584_v25 = vmul.f32 0.5, %v583_v9  ;;  %1155 = vrsqrt.f32 %v1571_v12  ;;  %v656_v44 = vmul.f32 %v640_v40, %v1365_v3 }
 0x11e   : > { %v349_v21 = vmul.f32 %v1559_v2, %v348_v36  ;;  %v620_v60 = vsel %vm619_vm15, %v1528_v0, %v616_v37  ;;  %vm354_vm3 = vweird.f32 %v1559_v2  ;;  %vm323_vm4 = vweird.f32 %v1568_v61 }
 0x11f   : > { %v564_v13 = vmul.f32 0.5, %v563_v62  ;;  %v585_v39 = vsub.f32 1.5, %v584_v25  ;;  %v1618_v38 = vsel %vm599_vm1, %v1522_v49, %v596_v30  ;;  %v663_v50 = vpack.c.bf16 %v655_v19, %v653_v23  ;;  %vm355_vm6 = vmor %vm353_vm13, %vm354_vm3 }
 0x120   : > { %v350_v35 = vmul.f32 0.5, %v349_v21  ;;  %v1602_v9 = vpop.eup %1151  ;;  %v664_v1 = vpack.c.bf16 %v656_v44, %v654_v24  ;;  %v651_v36 = vmul.f32 %v620_v60, %v1369_v15  ;;  %v652_v23 = vmul.f32 %v620_v60, %v1371_v16 }
 0x121   : > { %v565_v42 = vsub.f32 1.5, %v564_v13  ;;  %v358_v3 = vmul.f32 %v1602_v9, %v1557_v45  ;;  %v1615_v46 = vpop.xlane.xlu2 %284  ;;  %v586_v25 = vmul.f32 %v1547_v22, %v585_v39  ;;  %717 = vmatpush.bf16.xpose.msra.mxu0 %v663_v50  ;;  %1099 = vmatpush.bf16.xpose.msra.mxu2 %v663_v50  ;;  %v1645_v21 = vmul.f32 %v1618_v38, %v1373_v17 }
 0x122   : > { %v351_v63 = vsub.f32 1.5, %v350_v35  ;;  %v1620_v0 = vpop.eup %1153  ;;  %1157 = vrsqrt.f32 %v1615_v46  ;;  %v1625_v43 = vpop.xlane.xlu1 %302  ;;  %vm568_vm8 = vweird.f32 %v1553_v18  ;;  %vm364_vm9 = vweird.f32 %v1602_v9  ;;  %746 = vmatpush.bf16.xpose.msra.mxu1 %v664_v1  ;;  %1103 = vmatpush.bf16.xpose.msra.mxu3 %v664_v1 }
 0x123   : > { %v1622_v37 = vpop.xlane.xlu0 %290  ;;  %v1628_v10 = vpop.eup %1155  ;;  %v318_v49 = vmul.f32 %v1620_v0, %v1568_v61  ;;  %v359_v30 = vmul.f32 %v1602_v9, %v358_v3  ;;  %vm577_vm10 = vweird.f32 %v1571_v12  ;;  %v1658_v35 = vmul.f32 %v1553_v18, %v565_v42  ;;  %vm365_vm15 = vmor %vm363_vm5, %vm364_vm9 }
 0x124   : > { %v352_v62 = vmul.f32 %v1559_v2, %v351_v63  ;;  %v572_v15 = vmul.f32 %v1628_v10, %v1571_v12  ;;  %1159 = vrsqrt.f32 %v1622_v37  ;;  %vm324_vm12 = vweird.f32 %v1620_v0  ;;  %vm1714_vm3 = vmor %vm567_vm7, %vm568_vm8 }
 0x125   : > { %v319_v6 = vmul.f32 %v1620_v0, %v318_v49  ;;  %v360_v13 = vmul.f32 0.5, %v359_v30  ;;  %1161 = vrsqrt.f32 %v1625_v43  ;;  %vm578_vm13 = vweird.f32 %v1628_v10  ;;  %vm325_vm0 = vmor %vm323_vm4, %vm324_vm12 }
 0x126   : > { %v356_v16 = vsel %vm355_vm6, %v1559_v2, %v352_v62  ;;  %v573_v17 = vmul.f32 %v1628_v10, %v572_v15  ;;  %v590_v60 = vsel %vm589_vm11, %v1547_v22, %v586_v25  ;;  %vm333_vm14 = vweird.f32 %v1622_v37  ;;  %vm579_vm5 = vmor %vm577_vm10, %vm578_vm13 }
 0x127   : > { %v395_v40 = vmul.f32 %v356_v16, %v1399_v47  ;;  %v396_v24 = vmul.f32 %v356_v16, %v1402_v48  ;;  %v320_v2 = vmul.f32 0.5, %v319_v6  ;;  %v361_v47 = vsub.f32 1.5, %v360_v13 }
 0x128   : > { %v1665_v19 = vpop.eup %1157  ;;  %v574_v44 = vmul.f32 0.5, %v573_v17  ;;  %v661_v22 = vpack.c.bf16 %v651_v36, %v1597_v14  ;;  %v662_v1 = vpack.c.bf16 %v652_v23, %v650_v41  ;;  %v645_v25 = vmul.f32 %v590_v60, %v1389_v29 }
 0x129   : > { %v407_v48 = vpack.c.bf16 %v396_v24, %v395_v40  ;;  %v321_v39 = vsub.f32 1.5, %v320_v2  ;;  %v362_v42 = vmul.f32 %v1602_v9, %v361_v47  ;;  %v308_v58 = vmul.f32 %v1665_v19, %v1615_v46  ;;  %v1673_v63 = vpop.xlane.xlu2 %305 }
 0x12a   : > { %v1675_v3 = vpop.eup %1159  ;;  %v575_v50 = vsub.f32 1.5, %v574_v44  ;;  %1163 = vrsqrt.f32 %v1673_v63  ;;  %718 = vmatpush.bf16.xpose.msra.mxu0 %v661_v22  ;;  %v1698_v36 = vpop.xlane.xlu1 %293  ;;  %vm313_vm1 = vweird.f32 %v1615_v46  ;;  %1100 = vmatpush.bf16.xpose.msra.mxu2 %v661_v22  ;;  %vm314_vm4 = vweird.f32 %v1665_v19 }
 0x12b   : > { %415 = vst [vmem:[#allocation2 + $0x20] sm:$0xff] %v407_v48  ;;  %v322_v62 = vmul.f32 %v1620_v0, %v321_v39  ;;  %v366_v49 = vsel %vm365_vm15, %v1602_v9, %v362_v42  ;;  %v328_v30 = vmul.f32 %v1675_v3, %v1622_v37  ;;  %v1688_v15 = vpop.eup %1161  ;;  %v309_v9 = vmul.f32 %v1665_v19, %v308_v58  ;;  %vm315_vm8 = vmor %vm313_vm1, %vm314_vm4 }
 0x12c   : > { %v397_v45 = vmul.f32 %v366_v49, %v1413_v53  ;;  %v398_v14 = vmul.f32 %v366_v49, %v1416_v54  ;;  %v576_v41 = vmul.f32 %v1628_v10, %v575_v50  ;;  %v368_v61 = vmul.f32 %v1688_v15, %v1625_v43  ;;  %747 = vmatpush.bf16.xpose.msra.mxu1 %v662_v1 }
 0x12d   : > { %v326_v29 = vsel %vm325_vm0, %v1620_v0, %v322_v62  ;;  %v329_v23 = vmul.f32 %v1675_v3, %v328_v30  ;;  %v310_v6 = vmul.f32 0.5, %v309_v9  ;;  %1104 = vmatpush.bf16.xpose.msra.mxu3 %v662_v1  ;;  %vm334_vm2 = vweird.f32 %v1675_v3 }
 0x12e   : > { %v389_v53 = vmul.f32 %v326_v29, %v1440_v28  ;;  %v390_v54 = vmul.f32 %v326_v29, %v1443_v32  ;;  %v408_v16 = vpack.c.bf16 %v398_v14, %v397_v45  ;;  %v369_v0 = vmul.f32 %v1688_v15, %v368_v61  ;;  %vm1730_vm7 = vmor %vm333_vm14, %vm334_vm2 }
 0x12f   : > { %v330_v13 = vmul.f32 0.5, %v329_v23  ;;  %1165 = vrsqrt.f32 %v1698_v36  ;;  %v311_v32 = vsub.f32 1.5, %v310_v6  ;;  %v646_v17 = vmul.f32 %v590_v60, %v1391_v31 }
 0x130   : > { %v1164_v40 = vpop.eup %1163  ;;  %v404_v28 = vpack.c.bf16 %v390_v54, %v389_v53  ;;  %416 = vst [vmem:[#allocation2 + $0x28] sm:$0xff] %v408_v16  ;;  %v370_v47 = vmul.f32 0.5, %v369_v0  ;;  %vm373_vm6 = vweird.f32 %v1625_v43  ;;  %v659_v12 = vpack.c.bf16 %v1645_v21, %v645_v25 }
 0x131   : > { %v331_v2 = vsub.f32 1.5, %v330_v13  ;;  %v378_v5 = vmul.f32 %v1164_v40, %v1673_v63  ;;  %v312_v31 = vmul.f32 %v1665_v19, %v311_v32  ;;  %v648_v44 = vmul.f32 %v1618_v38, %v1375_v20 }
 0x132   : > { %412 = vst [vmem:[#allocation2 + $0x8] sm:$0xff] %v404_v28  ;;  %v580_v60 = vsel %vm579_vm5, %v1628_v10, %v576_v41  ;;  %v371_v42 = vsub.f32 1.5, %v370_v47  ;;  %vm374_vm9 = vweird.f32 %v1688_v15  ;;  %719 = vmatpush.bf16.xpose.msra.mxu0 %v659_v12  ;;  %v570_v20 = vsel %vm1714_vm3, %v1553_v18, %v1658_v35  ;;  %1101 = vmatpush.bf16.xpose.msra.mxu2 %v659_v12  ;;  %v1073_v6 = vld [vmem:[#allocation2 + $0x20] sm:$0xf]  ;;  %v1095_v24 = vld [vmem:[#allocation2 + $0x24] sm:$0xf] }
 0x133   : > { %v332_v39 = vmul.f32 %v1675_v3, %v331_v2  ;;  %v379_v37 = vmul.f32 %v1164_v40, %v378_v5  ;;  %v316_v58 = vsel %vm315_vm8, %v1665_v19, %v312_v31  ;;  %v660_v50 = vpack.c.bf16 %v648_v44, %v646_v17  ;;  %vm375_vm10 = vmor %vm373_vm6, %vm374_vm9 }
 0x134   : > { %v643_v38 = vmul.f32 %v580_v60, %v1435_v26  ;;  %v387_v21 = vmul.f32 %v316_v58, %v1446_v33  ;;  %v388_v22 = vmul.f32 %v316_v58, %v1449_v34  ;;  %v372_v19 = vmul.f32 %v1688_v15, %v371_v42 }
 0x135   : > { %v1166_v10 = vpop.eup %1165  ;;  %v336_v46 = vsel %vm1730_vm7, %v1675_v3, %v332_v39  ;;  %v380_v26 = vmul.f32 0.5, %v379_v37  ;;  %748 = vmatpush.bf16.xpose.msra.mxu1 %v660_v50  ;;  %1105 = vmatpush.bf16.xpose.msra.mxu3 %v660_v50  ;;  %vm384_vm11 = vweird.f32 %v1164_v40  ;;  %v641_v35 = vmul.f32 %v570_v20, %v1408_v51 }
 0x136   : > { %v391_v1 = vmul.f32 %v336_v46, %v1473_v56  ;;  %v392_v62 = vmul.f32 %v336_v46, %v1476_v57  ;;  %v338_v18 = vmul.f32 %v1166_v10, %v1698_v36  ;;  %v403_v33 = vpack.c.bf16 %v388_v22, %v387_v21 }
 0x137   : > { %v376_v34 = vsel %vm375_vm10, %v1688_v15, %v372_v19  ;;  %v381_v49 = vsub.f32 1.5, %v380_v26  ;;  %vm383_vm12 = vweird.f32 %v1673_v63  ;;  %v644_v30 = vmul.f32 %v580_v60, %v1437_v27  ;;  %v1096_v9 = vld [vmem:[#allocation2 + $0x24] sm:$0xf0]  ;;  %v1075_v23 = vld [vmem:[#allocation2 + $0x28] sm:$0xf0] }
 0x138   : > { %v405_v3 = vpack.c.bf16 %v392_v62, %v391_v1  ;;  %v399_v56 = vmul.f32 %v376_v34, %v1467_v4  ;;  %v400_v57 = vmul.f32 %v376_v34, %v1470_v55  ;;  %411 = vst [vmem:[#allocation2] sm:$0xff] %v403_v33  ;;  %v339_v43 = vmul.f32 %v1166_v10, %v338_v18  ;;  %vm385_vm13 = vmor %vm383_vm12, %vm384_vm11 }
 0x139   : > { %v382_v45 = vmul.f32 %v1164_v40, %v381_v49  ;;  %v657_v14 = vpack.c.bf16 %v643_v38, %v641_v35  ;;  %v642_v15 = vmul.f32 %v570_v20, %v1410_v52  ;;  %vm343_vm14 = vweird.f32 %v1698_v36  ;;  %v1092_v61 = vld [vmem:[#allocation2 + $0x4] sm:$0xf0]  ;;  %v1059_v36 = vld [vmem:[#allocation2 + $0x8] sm:$0xf0] }
 0x13a   : > { %413 = vst [vmem:[#allocation2 + $0x10] sm:$0xff] %v405_v3  ;;  %v409_v25 = vpack.c.bf16 %v400_v57, %v399_v56  ;;  %v340_v51 = vmul.f32 0.5, %v339_v43  ;;  %vm344_vm15 = vweird.f32 %v1166_v10  ;;  %v1078_v28 = vor.u32 %v1095_v24, %v1075_v23 }
 0x13b   : > { %v386_v4 = vsel %vm385_vm13, %v1164_v40, %v382_v45  ;;  %720 = vmatpush.bf16.xpose.msra.mxu0 %v657_v14  ;;  %v658_v55 = vpack.c.bf16 %v644_v30, %v642_v15  ;;  %1102 = vmatpush.bf16.xpose.msra.mxu2 %v657_v14  ;;  %vm345_vm0 = vmor %vm343_vm14, %vm344_vm15  ;;  %v1074_v40 = vor.u32 %v1096_v9, %v1073_v6  ;;  %vm787_vm1 = vcmask 523264  }
 0x13c   : > { %417 = vst [vmem:[#allocation2 + $0x30] sm:$0xff] %v409_v25  ;;  %v401_v63 = vmul.f32 %v386_v4, %v1479_v59  ;;  %v402_v27 = vmul.f32 %v386_v4, %v1482_v11  ;;  %v341_v41 = vsub.f32 1.5, %v340_v51  ;;  %vm419_vm2 = vcmask 7168  }
 0x13d   : > { %749 = vmatpush.bf16.xpose.msra.mxu1 %v658_v55  ;;  %1106 = vmatpush.bf16.xpose.msra.mxu3 %v658_v55  ;;  %vm966_vm3 = vcmask 0  }
 0x13e   : > { %v410_v52 = vpack.c.bf16 %v402_v27, %v401_v63  ;;  %v342_v29 = vmul.f32 %v1166_v10, %v341_v41 }
 0x13f   : > { %v1057_v53 = vld [vmem:[#allocation2] sm:$0xf]  ;;  %v1091_v54 = vld [vmem:[#allocation2 + $0x4] sm:$0xf] }
 0x140   : > { %418 = vst [vmem:[#allocation2 + $0x38] sm:$0xff] %v410_v52  ;;  %v346_v16 = vsel %vm345_vm0, %v1166_v10, %v342_v29  ;;  %v1058_v13 = vor.u32 %v1092_v61, %v1057_v53  ;;  %v1062_v59 = vor.u32 %v1091_v54, %v1059_v36 }
 0x141   : > { %v393_v11 = vmul.f32 %v346_v16, %v1498_v7  ;;  %v394_v0 = vmul.f32 %v346_v16, %v1501_v8  ;;  %v1065_v5 = vld [vmem:[#allocation2 + $0x10] sm:$0xf]  ;;  %v1093_v60 = vld [vmem:[#allocation2 + $0x14] sm:$0xf] }
 0x142   : > { %721 = vmatmul.bf16.vlgmr.msra.gmra.mxu0 %v1058_v13  ;;  %731 = vmatmul.bf16.vlgmr.msra.gmra.mxu2 %v1074_v40 }
 0x143   : > { %v406_v32 = vpack.c.bf16 %v394_v0, %v393_v11  ;;  %v1081_v31 = vld [vmem:[#allocation2 + $0x30] sm:$0xf]  ;;  %v1097_v7 = vld [vmem:[#allocation2 + $0x34] sm:$0xf] }
 0x144   : > { %760 = vmatmul.bf16.vlgmr.msra.gmra.mxu3 %v1078_v28  ;;  %750 = vmatmul.bf16.vlgmr.msra.gmra.mxu1 %v1062_v59 }
 0x145   : > { %414 = vst [vmem:[#allocation2 + $0x18] sm:$0xff] %v406_v32 }
 0x147   : > { %v1098_v2 = vld [vmem:[#allocation2 + $0x34] sm:$0xf0]  ;;  %v1083_v47 = vld [vmem:[#allocation2 + $0x38] sm:$0xf0] }
 0x148   : > { %v1082_v44 = vor.u32 %v1098_v2, %v1081_v31  ;;  %v1086_v8 = vor.u32 %v1097_v7, %v1083_v47 }
 0x14c   : > { %v1094_v17 = vld [vmem:[#allocation2 + $0x14] sm:$0xf0]  ;;  %v1067_v48 = vld [vmem:[#allocation2 + $0x18] sm:$0xf0] }
 0x14d   : > { %v1066_v12 = vor.u32 %v1094_v17, %v1065_v5  ;;  %v1070_v39 = vor.u32 %v1093_v60, %v1067_v48 }
 0x152   : > { %726 = vmatmul.bf16.gmra.mxu0 %v1066_v12  ;;  %736 = vmatmul.bf16.gmra.mxu2 %v1082_v44 }
 0x154   : > { %765 = vmatmul.bf16.gmra.mxu3 %v1086_v8  ;;  %755 = vmatmul.bf16.gmra.mxu1 %v1070_v39 }
 0x1bf   : > { %v722_v42 = vpop.f32.mrf.mxu0 }
 0x1c1   : > { %v751_v37 = vpop.f32.mrf.mxu1 }
 0x1c2   : > { %v752_v35 = vadd.f32 %v751_v37, %v722_v42 }
 0x1c4   : > { %v771_v45 = vsub.f32 1.0, %v752_v35 }
 0x1c5   : > { %v732_v58 = vpop.f32.mrf.mxu2 }
 0x1c6   : > { %v779_v52 = vmul.f32 0.5, %v771_v45 }
 0x1c7   : > { %v761_v50 = vpop.f32.mrf.mxu3  ;;  %v724_v20 = vpop.f32.mrf.mxu0 }
 0x1c8   : > { %v762_v18 = vadd.f32 %v761_v50, %v732_v58  ;;  %v788_v59 = vsel %vm787_vm1, %v779_v52, inf }
 0x1c9   : > { %v753_v38 = vpop.f32.mrf.mxu1 }
 0x1ca   : > { %v754_v33 = vadd.f32 %v753_v38, %v724_v20  ;;  %v775_v43 = vsub.f32 1.0, %v762_v18 }
 0x1cc   : > { %v772_v30 = vsub.f32 1.0, %v754_v33  ;;  %v783_v63 = vmul.f32 0.5, %v775_v43 }
 0x1cd   : > { %v734_v10 = vpop.f32.mrf.mxu2 }
 0x1ce   : > { %v780_v27 = vmul.f32 0.5, %v772_v30  ;;  %v792_v54 = vsel %vm787_vm1, %v783_v63, inf }
 0x1cf   : > { %v763_v46 = vpop.f32.mrf.mxu3  ;;  %v727_v21 = vpop.f32.mrf.mxu0  ;;  %v793_v24 = vmin.f32 %v788_v59, %v792_v54 }
 0x1d0   : > { %v764_v19 = vadd.f32 %v763_v46, %v734_v10  ;;  %v789_v36 = vsel %vm787_vm1, %v780_v27, inf }
 0x1d1   : > { %v756_v22 = vpop.f32.mrf.mxu1 }
 0x1d2   : > { %v776_v56 = vsub.f32 1.0, %v764_v19  ;;  %v757_v57 = vadd.f32 %v756_v22, %v727_v21 }
 0x1d4   : > { %v784_v14 = vmul.f32 0.5, %v776_v56  ;;  %v773_v15 = vsub.f32 1.0, %v757_v57 }
 0x1d5   : > { %v737_v1 = vpop.f32.mrf.mxu2 }
 0x1d6   : > { %v794_v29 = vsel %vm787_vm1, %v784_v14, inf  ;;  %v781_v23 = vmul.f32 0.5, %v773_v15 }
 0x1d7   : > { %v766_v62 = vpop.f32.mrf.mxu3  ;;  %v729_v26 = vpop.f32.mrf.mxu0  ;;  %v795_v13 = vmin.f32 %v789_v36, %v794_v29 }
 0x1d8   : > { %v767_v34 = vadd.f32 %v766_v62, %v737_v1  ;;  %v790_v11 = vsel %vm787_vm1, %v781_v23, inf }
 0x1d9   : > { %v758_v3 = vpop.f32.mrf.mxu1  ;;  %v800_v17 = vmin.f32 %v793_v24, %v795_v13 }
 0x1da   : > { %v759_v49 = vadd.f32 %v758_v3, %v729_v26  ;;  %v777_v25 = vsub.f32 1.0, %v767_v34 }
 0x1dc   : > { %v774_v51 = vsub.f32 1.0, %v759_v49  ;;  %v785_v41 = vmul.f32 0.5, %v777_v25 }
 0x1dd   : > { %v739_v4 = vpop.f32.mrf.mxu2 }
 0x1de   : > { %v782_v61 = vmul.f32 0.5, %v774_v51  ;;  %v796_v16 = vsel %vm787_vm1, %v785_v41, inf }
 0x1df   : > { %v768_v55 = vpop.f32.mrf.mxu3  ;;  %v797_v28 = vmin.f32 %v790_v11, %v796_v16 }
 0x1e0   : > { %v769_v9 = vadd.f32 %v768_v55, %v739_v4  ;;  %v791_v0 = vsel %vm787_vm1, %v782_v61, inf }
 0x1e2   : > { %v778_v53 = vsub.f32 1.0, %v769_v9 }
 0x1e4   : > { %v786_v6 = vmul.f32 0.5, %v778_v53 }
 0x1e6   : > { %v798_v40 = vsel %vm787_vm1, %v786_v6, inf }
 0x1e7   : > { %v799_v32 = vmin.f32 %v791_v0, %v798_v40 }
 0x1e9   : > { %v801_v2 = vmin.f32 %v797_v28, %v799_v32 }
 0x1eb   : > { %v802_v47 = vmin.f32 %v800_v17, %v801_v2 }
 0x1ed   : > { %v803_v5 = vrot.slane %v802_v47, 4 }
 0x1ef   : > { %v804_v48 = vmin.f32 %v802_v47, %v803_v5 }
 0x1f1   : > { %v805_v31 = vrot.slane %v804_v48, 2 }
 0x1f3   : > { %v806_v12 = vmin.f32 %v804_v48, %v805_v31 }
 0x1f5   : > { %v807_v44 = vrot.slane %v806_v12, 1 }
 0x1f7   : > { %v808_v7 = vmin.f32 %v806_v12, %v807_v44  ;;  %v1214_v44 = vmov -inf  }
 0x1f8   : > { %422 = vst.msk [vmem:[#allocation3 + $0x10] sm:$0xff] %vm419_vm2, %v1214_v44 }
 0x1f9   : > { %v809_v60 = vadd.f32 1e-05, %v808_v7  ;;  %420 = vst.msk [vmem:[#allocation3] sm:$0xff] %vm419_vm2, %v1214_v44 }
 0x1fa   : > { %421 = vst.msk [vmem:[#allocation3 + $0x8] sm:$0xff] %vm419_vm2, %v1214_v44 }
 0x1fb   : > { %1167 = vrcp.f32 %v809_v60  ;;  %423 = vst.msk [vmem:[#allocation3 + $0x18] sm:$0xff] %vm419_vm2, %v1214_v44 }
 0x1fc   : > { %424 = vst.msk [vmem:[#allocation3 + $0x20] sm:$0xff] %vm419_vm2, %v1214_v44 }
 0x1fd   : > { %425 = vst.msk [vmem:[#allocation3 + $0x28] sm:$0xff] %vm419_vm2, %v1214_v44 }
 0x1fe   : > { %426 = vst.msk [vmem:[#allocation3 + $0x30] sm:$0xff] %vm419_vm2, %v1214_v44 }
 0x1ff   : > { %427 = vst.msk [vmem:[#allocation3 + $0x38] sm:$0xff] %vm419_vm2, %v1214_v44 }
 0x201   : > { %v1168_v8 = vpop.eup %1167 }
 0x202   : > { %v811_v39 = vmul.f32 %v1168_v8, %v779_v52  ;;  %v812_v42 = vmul.f32 %v1168_v8, %v780_v27  ;;  %v813_v37 = vmul.f32 %v1168_v8, %v781_v23  ;;  %v814_v58 = vmul.f32 %v1168_v8, %v782_v61 }
 0x203   : > { %v815_v50 = vmul.f32 %v1168_v8, %v783_v63  ;;  %v816_v20 = vmul.f32 %v1168_v8, %v784_v14  ;;  %v817_v38 = vmul.f32 %v1168_v8, %v785_v41  ;;  %v818_v22 = vmul.f32 %v1168_v8, %v786_v6 }
 0x204   : > { %v819_v10 = vsub.f32 1.0, %v811_v39  ;;  %v820_v46 = vsub.f32 1.0, %v812_v42  ;;  %v821_v21 = vsub.f32 1.0, %v813_v37  ;;  %v822_v19 = vsub.f32 1.0, %v814_v58 }
 0x205   : > { %v823_v1 = vsub.f32 1.0, %v815_v50  ;;  %v824_v62 = vsub.f32 1.0, %v816_v20  ;;  %v825_v35 = vsub.f32 1.0, %v817_v38  ;;  %v826_v43 = vsub.f32 1.0, %v818_v22 }
 0x206   : > { %v827_v26 = vmul.f32 2.0, %v819_v10  ;;  %v828_v18 = vmul.f32 2.0, %v820_v46  ;;  %v829_v33 = vmul.f32 2.0, %v821_v21  ;;  %v830_v34 = vmul.f32 2.0, %v822_v19 }
 0x207   : > { %v831_v3 = vmul.f32 2.0, %v823_v1  ;;  %v832_v30 = vmul.f32 2.0, %v824_v62  ;;  %v833_v45 = vmul.f32 2.0, %v825_v35  ;;  %v834_v15 = vmul.f32 2.0, %v826_v43 }
 0x208   : > { %v835_v56 = vmul.f32 1.442695, %v827_v26  ;;  %v837_v57 = vmul.f32 1.442695, %v828_v18  ;;  %v839_v49 = vmul.f32 1.442695, %v829_v33 }
 0x209   : > { %v841_v25 = vmul.f32 1.442695, %v830_v34  ;;  %v843_v14 = vmul.f32 1.442695, %v831_v3  ;;  %v845_v51 = vmul.f32 1.442695, %v832_v30 }
 0x20a   : > { %1169 = vpow2.f32 %v835_v56  ;;  %v847_v4 = vmul.f32 1.442695, %v833_v45  ;;  %v849_v27 = vmul.f32 1.442695, %v834_v15  ;;  %v883_v18 = vld [vmem:[#allocation3 + $0x10] sm:$0xff]  ;;  %v882_v33 = vld [vmem:[#allocation3 + $0x8] sm:$0xff] }
 0x20b   : > { %1171 = vpow2.f32 %v837_v57  ;;  %v881_v34 = vld [vmem:[#allocation3] sm:$0xff]  ;;  %v886_v30 = vld [vmem:[#allocation3 + $0x28] sm:$0xff]  ;;  %v884_v45 = vld [vmem:[#allocation3 + $0x18] sm:$0xff] }
 0x20c   : > { %1173 = vpow2.f32 %v839_v49 }
 0x20d   : > { %1175 = vpow2.f32 %v841_v25  ;;  %v885_v25 = vld [vmem:[#allocation3 + $0x20] sm:$0xff] }
 0x20e   : > { %1177 = vpow2.f32 %v843_v14 }
 0x20f   : > { %1179 = vpow2.f32 %v845_v51 }
 0x210   : > { %v1170_v55 = vpop.eup %1169  ;;  %1181 = vpow2.f32 %v847_v4 }
 0x211   : > { %v1172_v63 = vpop.eup %1171  ;;  %v851_v41 = vsel %vm787_vm1, %v1170_v55, 0.0  ;;  %1183 = vpow2.f32 %v849_v27 }
 0x212   : > { %v1174_v9 = vpop.eup %1173  ;;  %v852_v52 = vsel %vm787_vm1, %v1172_v63, 0.0 }
 0x213   : > { %v1176_v29 = vpop.eup %1175  ;;  %v853_v23 = vadd.f32 %v852_v52, %v851_v41  ;;  %v854_v61 = vsel %vm787_vm1, %v1174_v9, 0.0 }
 0x214   : > { %v1178_v53 = vpop.eup %1177  ;;  %v856_v36 = vsel %vm787_vm1, %v1176_v29, 0.0 }
 0x215   : > { %v855_v54 = vadd.f32 %v854_v61, %v853_v23  ;;  %v1180_v16 = vpop.eup %1179  ;;  %v858_v13 = vsel %vm787_vm1, %v1178_v53, 0.0  ;;  %v887_v23 = vld [vmem:[#allocation3 + $0x30] sm:$0xff] }
 0x216   : > { %v1182_v59 = vpop.eup %1181  ;;  %v860_v0 = vsel %vm787_vm1, %v1180_v16, 0.0 }
 0x217   : > { %v857_v6 = vadd.f32 %v856_v36, %v855_v54  ;;  %v1184_v40 = vpop.eup %1183  ;;  %v862_v28 = vsel %vm787_vm1, %v1182_v59, 0.0 }
 0x218   : > { %v864_v17 = vsel %vm787_vm1, %v1184_v40, 0.0 }
 0x219   : > { %v859_v11 = vadd.f32 %v858_v13, %v857_v6 }
 0x21b   : > { %v861_v24 = vadd.f32 %v860_v0, %v859_v11 }
 0x21d   : > { %v863_v32 = vadd.f32 %v862_v28, %v861_v24 }
 0x21f   : > { %v865_v2 = vadd.f32 %v864_v17, %v863_v32 }
 0x221   : > { %v866_v47 = vrot.slane %v865_v2, 4 }
 0x223   : > { %v867_v5 = vadd.f32 %v866_v47, %v865_v2 }
 0x225   : > { %v868_v48 = vrot.slane %v867_v5, 2 }
 0x227   : > { %v869_v31 = vadd.f32 %v868_v48, %v867_v5 }
 0x229   : > { %v870_v12 = vrot.slane %v869_v31, 1 }
 0x22b   : > { %v871_v7 = vadd.f32 %v870_v12, %v869_v31 }
 0x22d   : > { %1185 = vrcp.f32 %v871_v7 }
 0x233   : > { %v1186_v60 = vpop.eup %1185 }
 0x234   : > { %v875_v8 = vmul.f32 %v1186_v60, %v1174_v9  ;;  %v874_v39 = vmul.f32 %v1186_v60, %v1172_v63  ;;  %v873_v42 = vmul.f32 %v1186_v60, %v1170_v55  ;;  %v878_v20 = vmul.f32 %v1186_v60, %v1180_v16 }
 0x235   : > { %v877_v38 = vmul.f32 %v1186_v60, %v1178_v53  ;;  %v876_v10 = vmul.f32 %v1186_v60, %v1176_v29  ;;  %v880_v19 = vmul.f32 %v1186_v60, %v1184_v40  ;;  %v879_v1 = vmul.f32 %v1186_v60, %v1182_v59  ;;  %v888_v29 = vld [vmem:[#allocation3 + $0x38] sm:$0xff] }
 0x236   : > { %v895_v37 = vsel %vm787_vm1, %v875_v8, -inf  ;;  %v892_v58 = vsel %vm787_vm1, %v874_v39, -inf  ;;  %v889_v50 = vsel %vm787_vm1, %v873_v42, -inf  ;;  %v904_v46 = vsel %vm787_vm1, %v878_v20, -inf }
 0x237   : > { %896 = vmax.xlane.f32.xlu1 %v895_v37  ;;  %893 = vmax.xlane.f32.xlu0 %v892_v58  ;;  %v901_v21 = vsel %vm787_vm1, %v877_v38, -inf  ;;  %v898_v22 = vsel %vm787_vm1, %v876_v10, -inf  ;;  %v910_v62 = vsel %vm787_vm1, %v880_v19, -inf  ;;  %v907_v26 = vsel %vm787_vm1, %v879_v1, -inf }
 0x238   : > { %890 = vmax.xlane.f32.xlu2 %v889_v50 }
 0x23f   : > { %905 = vmax.xlane.f32.xlu1 %v904_v46  ;;  %902 = vmax.xlane.f32.xlu0 %v901_v21 }
 0x240   : > { %899 = vmax.xlane.f32.xlu2 %v898_v22 }
 0x247   : > { %911 = vmax.xlane.f32.xlu0 %v910_v62 }
 0x248   : > { %908 = vmax.xlane.f32.xlu2 %v907_v26 }
 0x2aa   : > { %v897_v35 = vpop.xlane.xlu1 %896  ;;  %v894_v3 = vpop.xlane.xlu0 %893 }
 0x2ab   : > { %v915_v56 = vmax.f32 %v883_v18, %v897_v35  ;;  %v914_v57 = vmax.f32 %v882_v33, %v894_v3  ;;  %v891_v49 = vpop.xlane.xlu2 %890 }
 0x2ac   : > { %v913_v43 = vmax.f32 %v881_v34, %v891_v49 }
 0x2ad   : > { %924 = vst.msk [vmem:[#allocation3 + $0x10] sm:$0xff] %vm419_vm2, %v915_v56 }
 0x2ae   : > { %923 = vst.msk [vmem:[#allocation3 + $0x8] sm:$0xff] %vm419_vm2, %v914_v57 }
 0x2af   : > { %922 = vst.msk [vmem:[#allocation3] sm:$0xff] %vm419_vm2, %v913_v43 }
 0x2b2   : > { %v906_v14 = vpop.xlane.xlu1 %905  ;;  %v903_v15 = vpop.xlane.xlu0 %902 }
 0x2b3   : > { %v918_v51 = vmax.f32 %v886_v30, %v906_v14  ;;  %v917_v4 = vmax.f32 %v885_v25, %v903_v15  ;;  %v900_v55 = vpop.xlane.xlu2 %899 }
 0x2b4   : > { %v916_v63 = vmax.f32 %v884_v45, %v900_v55  ;;  %v935_v61 = vld [vmem:[#allocation3 + $0x10] sm:$0xff] }
 0x2b5   : > { %v934_v27 = vld [vmem:[#allocation3 + $0x8] sm:$0xff]  ;;  %927 = vst.msk [vmem:[#allocation3 + $0x28] sm:$0xff] %vm419_vm2, %v918_v51  ;;  %v944_v13 = vsel %vm419_vm2, %v935_v61, 0.0 }
 0x2b6   : > { %v933_v41 = vld [vmem:[#allocation3] sm:$0xff]  ;;  %926 = vst.msk [vmem:[#allocation3 + $0x20] sm:$0xff] %vm419_vm2, %v917_v4  ;;  %v942_v9 = vsel %vm419_vm2, %v934_v27, 0.0 }
 0x2b7   : > { %v941_v52 = vsel %vm419_vm2, %v933_v41, 0.0  ;;  %925 = vst.msk [vmem:[#allocation3 + $0x18] sm:$0xff] %vm419_vm2, %v916_v63 }
 0x2b8   : > { %v943_v53 = vadd.f32 %v942_v9, %v941_v52 }
 0x2ba   : > { %v912_v54 = vpop.xlane.xlu0 %911  ;;  %v945_v11 = vadd.f32 %v944_v13, %v943_v53 }
 0x2bb   : > { %v920_v36 = vmax.f32 %v888_v29, %v912_v54  ;;  %v909_v16 = vpop.xlane.xlu2 %908 }
 0x2bc   : > { %v919_v6 = vmax.f32 %v887_v23, %v909_v16  ;;  %v938_v28 = vld [vmem:[#allocation3 + $0x28] sm:$0xff] }
 0x2bd   : > { %929 = vst.msk [vmem:[#allocation3 + $0x38] sm:$0xff] %vm419_vm2, %v920_v36  ;;  %v937_v59 = vld [vmem:[#allocation3 + $0x20] sm:$0xff]  ;;  %v950_v2 = vsel %vm419_vm2, %v938_v28, 0.0 }
 0x2be   : > { %v936_v0 = vld [vmem:[#allocation3 + $0x18] sm:$0xff]  ;;  %928 = vst.msk [vmem:[#allocation3 + $0x30] sm:$0xff] %vm419_vm2, %v919_v6  ;;  %v948_v32 = vsel %vm419_vm2, %v937_v59, 0.0 }
 0x2bf   : > { %v946_v40 = vsel %vm419_vm2, %v936_v0, 0.0 }
 0x2c0   : > { %v947_v24 = vadd.f32 %v946_v40, %v945_v11 }
 0x2c2   : > { %v949_v17 = vadd.f32 %v948_v32, %v947_v24 }
 0x2c4   : > { %v940_v47 = vld [vmem:[#allocation3 + $0x38] sm:$0xff]  ;;  %v951_v5 = vadd.f32 %v950_v2, %v949_v17 }
 0x2c5   : > { %v939_v48 = vld [vmem:[#allocation3 + $0x30] sm:$0xff]  ;;  %v954_v44 = vsel %vm419_vm2, %v940_v47, 0.0 }
 0x2c6   : > { %v952_v31 = vsel %vm419_vm2, %v939_v48, 0.0 }
 0x2c7   : > { %v953_v12 = vadd.f32 %v952_v31, %v951_v5 }
 0x2c9   : > { %v955_v7 = vadd.f32 %v954_v44, %v953_v12 }
 0x2cb   : > { %v956_v60 = vrot.slane %v955_v7, 4 }
 0x2cd   : > { %v957_v8 = vadd.f32 %v956_v60, %v955_v7 }
 0x2cf   : > { %v958_v39 = vrot.slane %v957_v8, 2 }
 0x2d1   : > { %v959_v42 = vadd.f32 %v958_v39, %v957_v8 }
 0x2d3   : > { %v960_v37 = vrot.slane %v959_v42, 1 }
 0x2d5   : > { %v961_v58 = vadd.f32 %v960_v37, %v959_v42 }
 0x2d7   : > { %v962_v50 = vmul.f32 0.015625, %v961_v58 }
 0x2d9   : > { %1187 = vlog2.f32 %v962_v50 }
 0x2df   : > { %v1188_v20 = vpop.eup %1187 }
 0x2e0   : > { %v964_v38 = vmul.f32 0.6931472, %v1188_v20 }
 0x2e2   : > { %v965_v10 = vsub.f32 0.0, %v964_v38 }
 0x2e4   : > { %967 = vst.msk [vmem:[%s190_s22] sm:$0x1] %vm966_vm3, %v965_v10 }
 0x2e5 PF: > { %s12_s11 = sadd.s32 1, %s1211_s11   ;;  %s1843_s9 = smov %s1207_s10 }
 0x2e6   : > { %p9_p5 = scmp.ge.s32.totalorder %s12_s11, 4   ;;  %s1844_s10 = smov %s1846_s12 }
 0x2e8   :  { %11 = sbr.rel (!%p9_p5) target bundleno = 2 (0x2), region = 70 }

</bundles_post_ra>
